<compile_context>
chip_gen: v7x
topology: tpu7x:2x2x1
jax: 0.10.0
libtpu: 0.0.40
codegen_flags: <defaults>
</compile_context>

<pallas_src>
import functools

import jax
import jax.numpy as jnp
from jax.experimental import pallas as pl
from jax.experimental.pallas import tpu as pltpu


KH = KW = 3  # kernel_size of layer2


# ------------------------------ Pallas kernel ------------------------------ #

def _dy_cnn_fused_kernel(p_ref, wc_ref, bc_ref, wf_ref, bf_ref, o_ref):
    """Fused 3x3 valid conv + ReLU -> folded (linear3 @ linear2 @ linear1).

    p_ref : (P*N, K)       im2col patches, rows ordered (p, n); K = KH*KW*Cin
    wc_ref: (K, Cout)      conv weight as a matmul operand
    bc_ref: (1, Cout)      conv bias
    wf_ref: (P, Cout, D)   folded MLP weight, columns permuted so the kernel's
                           (p, c)-ordered activation feeds it directly (absorbs the
                           NCHW flatten that torch's .view() would have produced)
    bf_ref: (1, D)         folded MLP bias
    o_ref : (N, D)         final output
    """
    # conv as a single im2col matmul (+bias, ReLU) on the MXU
    act = jnp.dot(p_ref[...], wc_ref[...], preferred_element_type=jnp.float32)
    act = jnp.maximum(act + bc_ref[...], 0.0)                 # (P*N, Cout)

    n = o_ref.shape[0]
    num_p = wf_ref.shape[0]
    # Contraction over (p, c) without any in-kernel reshape/relayout: one small
    # matmul per spatial position, statically unrolled (P = OH*OW is small).
    # Seed the accumulator with position 0's contribution plus the folded bias.
    out = jnp.dot(act[0:n, :], wf_ref[0],
                  preferred_element_type=jnp.float32) + bf_ref[...]
    for p in range(1, num_p):
        out = out + jnp.dot(act[p * n:(p + 1) * n, :], wf_ref[p],
                            preferred_element_type=jnp.float32)
    o_ref[...] = out


# ------------------------------ JAX glue ----------------------------------- #

def _make_patches_pmajor(x, kh, kw):
    """x: (N, C, H, W) -> im2col patches (OH*OW*N, kh*kw*C), rows ordered (p, n),
    feature index ordered (i, j, ci).  Only 9 channel-block slices + 1 concat."""
    n, c, h, w = x.shape
    oh, ow = h - kh + 1, w - kw + 1
    xh = jnp.transpose(x, (0, 2, 3, 1))                       # NHWC
    cols = [xh[:, i:i + oh, j:j + ow, :] for i in range(kh) for j in range(kw)]
    pat = jnp.concatenate(cols, axis=-1)                      # (N, OH, OW, kh*kw*C)
    pat = jnp.transpose(pat, (1, 2, 0, 3))                    # (OH, OW, N, K): p-major rows
    return pat.reshape(oh * ow * n, kh * kw * c), oh, ow


def fold_params(params, oh, ow):
    """Fold the activation-free Linear chain and lay out weights for the kernel."""
    cout = params["conv2_w"].shape[0]
    p_total = oh * ow
    # conv weight -> (KH*KW*Cin, Cout), matching patch feature order (i, j, ci)
    wc = jnp.transpose(params["conv2_w"], (2, 3, 1, 0)).reshape(-1, cout)
    bc = params["conv2_b"].reshape(1, cout)
    # fold linear1/2/3: y = flat @ Wf.T + bf  with Wf = W3 W2 W1, bf = W3(W2 b1 + b2) + b3
    w1, b1 = params["w1"], params["b1"]
    w2, b2 = params["w2"], params["b2"]
    w3, b3 = params["w3"], params["b3"]
    wf = w3 @ (w2 @ w1)                                       # (24, F); F index = c*P + p
    bf = w3 @ (w2 @ b1 + b2) + b3                              # (24,)
    # permute columns (c*P + p) -> (P, Cout, 24) so the NHWC-ordered activation feeds it
    wf3 = jnp.transpose(wf.reshape(wf.shape[0], cout, p_total), (2, 1, 0))
    return {"wc": wc, "bc": bc, "wf3": wf3, "bf": bf.reshape(1, -1)}


@jax.jit
def dy_cnn_forward(fused, x):
    patches, oh, ow = _make_patches_pmajor(x, KH, KW)
    m, k = patches.shape
    n = x.shape[0]
    wc, bc, wf3, bf = fused["wc"], fused["bc"], fused["wf3"], fused["bf"]
    cout = wc.shape[1]
    p_total, _, d_out = wf3.shape

    flops = 2 * m * k * cout + 2 * m * cout * d_out
    bytes_accessed = 4 * (patches.size + wc.size + bc.size + wf3.size + bf.size + n * d_out)

    return pl.pallas_call(
        _dy_cnn_fused_kernel,
        grid=(1,),
        in_specs=[
            pl.BlockSpec((m, k), lambda i: (0, 0)),
            pl.BlockSpec((k, cout), lambda i: (0, 0)),
            pl.BlockSpec((1, cout), lambda i: (0, 0)),
            pl.BlockSpec((p_total, cout, d_out), lambda i: (0, 0, 0)),
            pl.BlockSpec((1, d_out), lambda i: (0, 0)),
        ],
        out_specs=pl.BlockSpec((n, d_out), lambda i: (0, 0)),
        out_shape=jax.ShapeDtypeStruct((n, d_out), jnp.float32),
        compiler_params=pltpu.CompilerParams(
            dimension_semantics=("arbitrary",),
            vmem_limit_bytes=16 << 20,          # fits every generation incl. v7x (64 MiB)
        ),
        cost_estimate=pl.CostEstimate(
            flops=flops, transcendentals=0, bytes_accessed=bytes_accessed),
    )(patches, wc, bc, wf3, bf)


# --------------------------- parameter init -------------------------------- #

def _uniform(key, shape, fan_in):
    bound = 1.0 / jnp.sqrt(jnp.float32(fan_in))
    return jax.random.uniform(key, shape, jnp.float32, -bound, bound)


def init_params(key, flatten_dim):
    ks = jax.random.split(key, 12)
    p = {}
    # layer1: Conv2d(3, 32, 3)   -- dead in the torch forward, kept but unused
    p["conv1_w"] = _uniform(ks[0], (32, 3, 3, 3), 3 * 9)
    p["conv1_b"] = _uniform(ks[1], (32,), 3 * 9)
    # layer2: Conv2d(32, 64, 3)
    p["conv2_w"] = _uniform(ks[2], (64, 32, 3, 3), 32 * 9)
    p["conv2_b"] = _uniform(ks[3], (64,), 32 * 9)
    # linear1: declared (339 -> 600); see TODO below about in_features
    p["w1"] = _uniform(ks[4], (600, flatten_dim), flatten_dim)
    p["b1"] = _uniform(ks[5], (600,), flatten_dim)
    # linear2: 600 -> 120
    p["w2"] = _uniform(ks[6], (120, 600), 600)
    p["b2"] = _uniform(ks[7], (120,), 600)
    # linear3: 120 -> 24
    p["w3"] = _uniform(ks[8], (24, 120), 120)
    p["b3"] = _uniform(ks[9], (24,), 120)
    # linear4: 24 -> 1 (declared but never used in the torch forward)
    p["w4"] = _uniform(ks[10], (1, 24), 24)
    p["b4"] = _uniform(ks[11], (1,), 24)
    return p


def _reference_forward(params, x):
    """Unfused pure-JAX reference of the same (literal) forward, for validation."""
    out = jax.lax.conv_general_dilated(
        x, params["conv2_w"], window_strides=(1, 1), padding="VALID",
        dimension_numbers=("NCHW", "OIHW", "NCHW"),
        precision=jax.lax.Precision.HIGHEST)
    out = jnp.maximum(out + params["conv2_b"].reshape(1, -1, 1, 1), 0.0)
    flat = out.reshape(out.shape[0], -1)
    h = flat @ params["w1"].T + params["b1"]
    h = h @ params["w2"].T + params["b2"]
    return h @ params["w3"].T + params["b3"]


# ------------------------------ main ---------------------------------------- #

if __name__ == "__main__":
    key = jax.random.PRNGKey(0)
    kx, kp = jax.random.split(key)

    # TODO(synk): torch forward evaluates relu(layer1(x)) then discards the result;
    # layer1 expects 3 input channels while layer2 is applied to the same x, so x
    # must carry 32 channels and the dead/shape-incompatible layer1 branch is omitted.
    N, C, H, W = 2, 32, 8, 8
    x = jax.random.normal(kx, (N, C, H, W), dtype=jnp.float32)

    OH, OW = H - KH + 1, W - KW + 1
    # TODO(synk): linear1 is declared with in_features=339, which cannot equal any
    # 64-channel conv flatten size; the actual flatten size (64*OH*OW) is used.
    flatten_dim = 64 * OH * OW
    params = init_params(kp, flatten_dim)
    fused = fold_params(params, OH, OW)     # one-time weight folding / re-layout

    out = dy_cnn_forward(fused, x)
    jax.block_until_ready(out)
    assert out.shape == (N, 24) and out.dtype == jnp.float32

    ref = _reference_forward(params, x)
    assert bool(jnp.allclose(out, ref, rtol=5e-2, atol=5e-2)), (
        "mismatch vs reference, max abs diff "
        f"{float(jnp.max(jnp.abs(out - ref)))}")
    print("KERNEL_OK")
</pallas_src>

<mosaic_0001>
module attributes {stable_mosaic.version = 11 : i64} {
  func.func @_dy_cnn_fused_kernel(%arg0: i32, %arg1: memref<72x288xf32, #tpu.memory_space<vmem>>, %arg2: memref<288x64xf32, #tpu.memory_space<vmem>>, %arg3: memref<1x64xf32, #tpu.memory_space<vmem>>, %arg4: memref<36x64x24xf32, #tpu.memory_space<vmem>>, %arg5: memref<1x24xf32, #tpu.memory_space<vmem>>, %arg6: memref<2x24xf32, #tpu.memory_space<vmem>>) attributes {dimension_semantics = [#tpu.dimension_semantics<arbitrary>], iteration_bounds = array<i64: 1>, scalar_prefetch = 0 : i64, scratch_operands = 0 : i64, tpu.core_type = #tpu.core_type<tc>, window_params = [{pipeline_mode = #tpu.pipeline_mode<synchronous>, transform_indices = @transform_0, window_bounds = array<i64: 72, 288>}, {pipeline_mode = #tpu.pipeline_mode<synchronous>, transform_indices = @transform_1, window_bounds = array<i64: 288, 64>}, {pipeline_mode = #tpu.pipeline_mode<synchronous>, transform_indices = @transform_2, window_bounds = array<i64: 1, 64>}, {pipeline_mode = #tpu.pipeline_mode<synchronous>, transform_indices = @transform_3, window_bounds = array<i64: 36, 64, 24>}, {pipeline_mode = #tpu.pipeline_mode<synchronous>, transform_indices = @transform_4, window_bounds = array<i64: 1, 24>}, {pipeline_mode = #tpu.pipeline_mode<synchronous>, transform_indices = @transform_5, window_bounds = array<i64: 2, 24>}]} {
    %c0 = arith.constant 0 : index
    %c0_0 = arith.constant 0 : index
    %0 = vector.load %arg1[%c0, %c0_0] : memref<72x288xf32, #tpu.memory_space<vmem>>, vector<72x288xf32>
    %c0_1 = arith.constant 0 : index
    %c0_2 = arith.constant 0 : index
    %1 = vector.load %arg2[%c0_1, %c0_2] : memref<288x64xf32, #tpu.memory_space<vmem>>, vector<288x64xf32>
    %cst = arith.constant dense<0.000000e+00> : vector<72x64xf32>
    %2 = tpu.matmul %0, %1, %cst {dimension_numbers = #tpu.dot_dimension_numbers<[1], [0], [0], [1], [0, 0, 1, 1], [], []>} : vector<72x288xf32>, vector<288x64xf32>, vector<72x64xf32> -> vector<72x64xf32>
    %c0_3 = arith.constant 0 : index
    %c0_4 = arith.constant 0 : index
    %3 = vector.load %arg3[%c0_3, %c0_4] : memref<1x64xf32, #tpu.memory_space<vmem>>, vector<1x64xf32>
    %4 = vector.broadcast %3 : vector<1x64xf32> to vector<72x64xf32>
    %5 = arith.addf %2, %4 : vector<72x64xf32>
    %cst_5 = arith.constant 0.000000e+00 : f32
    %6 = vector.broadcast %cst_5 : f32 to vector<72x64xf32>
    %7 = arith.maximumf %5, %6 : vector<72x64xf32>
    %8 = vector.extract_strided_slice %7 {offsets = [0, 0], sizes = [2, 64], strides = [1, 1]} : vector<72x64xf32> to vector<2x64xf32>
    %c0_6 = arith.constant 0 : index
    %c0_7 = arith.constant 0 : index
    %c0_8 = arith.constant 0 : index
    %9 = vector.load %arg4[%c0_6, %c0_7, %c0_8] : memref<36x64x24xf32, #tpu.memory_space<vmem>>, vector<1x64x24xf32>
    %10 = vector.shape_cast %9 : vector<1x64x24xf32> to vector<64x24xf32>
    %cst_9 = arith.constant dense<0.000000e+00> : vector<2x24xf32>
    %11 = tpu.matmul %8, %10, %cst_9 {dimension_numbers = #tpu.dot_dimension_numbers<[1], [0], [0], [1], [0, 0, 1, 1], [], []>} : vector<2x64xf32>, vector<64x24xf32>, vector<2x24xf32> -> vector<2x24xf32>
    %c0_10 = arith.constant 0 : index
    %c0_11 = arith.constant 0 : index
    %12 = vector.load %arg5[%c0_10, %c0_11] : memref<1x24xf32, #tpu.memory_space<vmem>>, vector<1x24xf32>
    %13 = vector.broadcast %12 : vector<1x24xf32> to vector<2x24xf32>
    %14 = arith.addf %11, %13 : vector<2x24xf32>
    %15 = vector.extract_strided_slice %7 {offsets = [2, 0], sizes = [2, 64], strides = [1, 1]} : vector<72x64xf32> to vector<2x64xf32>
    %c1 = arith.constant 1 : index
    %c0_12 = arith.constant 0 : index
    %c0_13 = arith.constant 0 : index
    %16 = vector.load %arg4[%c1, %c0_12, %c0_13] : memref<36x64x24xf32, #tpu.memory_space<vmem>>, vector<1x64x24xf32>
    %17 = vector.shape_cast %16 : vector<1x64x24xf32> to vector<64x24xf32>
    %cst_14 = arith.constant dense<0.000000e+00> : vector<2x24xf32>
    %18 = tpu.matmul %15, %17, %cst_14 {dimension_numbers = #tpu.dot_dimension_numbers<[1], [0], [0], [1], [0, 0, 1, 1], [], []>} : vector<2x64xf32>, vector<64x24xf32>, vector<2x24xf32> -> vector<2x24xf32>
    %19 = arith.addf %14, %18 : vector<2x24xf32>
    %20 = vector.extract_strided_slice %7 {offsets = [4, 0], sizes = [2, 64], strides = [1, 1]} : vector<72x64xf32> to vector<2x64xf32>
    %c2 = arith.constant 2 : index
    %c0_15 = arith.constant 0 : index
    %c0_16 = arith.constant 0 : index
    %21 = vector.load %arg4[%c2, %c0_15, %c0_16] : memref<36x64x24xf32, #tpu.memory_space<vmem>>, vector<1x64x24xf32>
    %22 = vector.shape_cast %21 : vector<1x64x24xf32> to vector<64x24xf32>
    %cst_17 = arith.constant dense<0.000000e+00> : vector<2x24xf32>
    %23 = tpu.matmul %20, %22, %cst_17 {dimension_numbers = #tpu.dot_dimension_numbers<[1], [0], [0], [1], [0, 0, 1, 1], [], []>} : vector<2x64xf32>, vector<64x24xf32>, vector<2x24xf32> -> vector<2x24xf32>
    %24 = arith.addf %19, %23 : vector<2x24xf32>
    %25 = vector.extract_strided_slice %7 {offsets = [6, 0], sizes = [2, 64], strides = [1, 1]} : vector<72x64xf32> to vector<2x64xf32>
    %c3 = arith.constant 3 : index
    %c0_18 = arith.constant 0 : index
    %c0_19 = arith.constant 0 : index
    %26 = vector.load %arg4[%c3, %c0_18, %c0_19] : memref<36x64x24xf32, #tpu.memory_space<vmem>>, vector<1x64x24xf32>
    %27 = vector.shape_cast %26 : vector<1x64x24xf32> to vector<64x24xf32>
    %cst_20 = arith.constant dense<0.000000e+00> : vector<2x24xf32>
    %28 = tpu.matmul %25, %27, %cst_20 {dimension_numbers = #tpu.dot_dimension_numbers<[1], [0], [0], [1], [0, 0, 1, 1], [], []>} : vector<2x64xf32>, vector<64x24xf32>, vector<2x24xf32> -> vector<2x24xf32>
    %29 = arith.addf %24, %28 : vector<2x24xf32>
    %30 = vector.extract_strided_slice %7 {offsets = [8, 0], sizes = [2, 64], strides = [1, 1]} : vector<72x64xf32> to vector<2x64xf32>
    %c4 = arith.constant 4 : index
    %c0_21 = arith.constant 0 : index
    %c0_22 = arith.constant 0 : index
    %31 = vector.load %arg4[%c4, %c0_21, %c0_22] : memref<36x64x24xf32, #tpu.memory_space<vmem>>, vector<1x64x24xf32>
    %32 = vector.shape_cast %31 : vector<1x64x24xf32> to vector<64x24xf32>
    %cst_23 = arith.constant dense<0.000000e+00> : vector<2x24xf32>
    %33 = tpu.matmul %30, %32, %cst_23 {dimension_numbers = #tpu.dot_dimension_numbers<[1], [0], [0], [1], [0, 0, 1, 1], [], []>} : vector<2x64xf32>, vector<64x24xf32>, vector<2x24xf32> -> vector<2x24xf32>
    %34 = arith.addf %29, %33 : vector<2x24xf32>
    %35 = vector.extract_strided_slice %7 {offsets = [10, 0], sizes = [2, 64], strides = [1, 1]} : vector<72x64xf32> to vector<2x64xf32>
    %c5 = arith.constant 5 : index
    %c0_24 = arith.constant 0 : index
    %c0_25 = arith.constant 0 : index
    %36 = vector.load %arg4[%c5, %c0_24, %c0_25] : memref<36x64x24xf32, #tpu.memory_space<vmem>>, vector<1x64x24xf32>
    %37 = vector.shape_cast %36 : vector<1x64x24xf32> to vector<64x24xf32>
    %cst_26 = arith.constant dense<0.000000e+00> : vector<2x24xf32>
    %38 = tpu.matmul %35, %37, %cst_26 {dimension_numbers = #tpu.dot_dimension_numbers<[1], [0], [0], [1], [0, 0, 1, 1], [], []>} : vector<2x64xf32>, vector<64x24xf32>, vector<2x24xf32> -> vector<2x24xf32>
    %39 = arith.addf %34, %38 : vector<2x24xf32>
    %40 = vector.extract_strided_slice %7 {offsets = [12, 0], sizes = [2, 64], strides = [1, 1]} : vector<72x64xf32> to vector<2x64xf32>
    %c6 = arith.constant 6 : index
    %c0_27 = arith.constant 0 : index
    %c0_28 = arith.constant 0 : index
    %41 = vector.load %arg4[%c6, %c0_27, %c0_28] : memref<36x64x24xf32, #tpu.memory_space<vmem>>, vector<1x64x24xf32>
    %42 = vector.shape_cast %41 : vector<1x64x24xf32> to vector<64x24xf32>
    %cst_29 = arith.constant dense<0.000000e+00> : vector<2x24xf32>
    %43 = tpu.matmul %40, %42, %cst_29 {dimension_numbers = #tpu.dot_dimension_numbers<[1], [0], [0], [1], [0, 0, 1, 1], [], []>} : vector<2x64xf32>, vector<64x24xf32>, vector<2x24xf32> -> vector<2x24xf32>
    %44 = arith.addf %39, %43 : vector<2x24xf32>
    %45 = vector.extract_strided_slice %7 {offsets = [14, 0], sizes = [2, 64], strides = [1, 1]} : vector<72x64xf32> to vector<2x64xf32>
    %c7 = arith.constant 7 : index
    %c0_30 = arith.constant 0 : index
    %c0_31 = arith.constant 0 : index
    %46 = vector.load %arg4[%c7, %c0_30, %c0_31] : memref<36x64x24xf32, #tpu.memory_space<vmem>>, vector<1x64x24xf32>
    %47 = vector.shape_cast %46 : vector<1x64x24xf32> to vector<64x24xf32>
    %cst_32 = arith.constant dense<0.000000e+00> : vector<2x24xf32>
    %48 = tpu.matmul %45, %47, %cst_32 {dimension_numbers = #tpu.dot_dimension_numbers<[1], [0], [0], [1], [0, 0, 1, 1], [], []>} : vector<2x64xf32>, vector<64x24xf32>, vector<2x24xf32> -> vector<2x24xf32>
    %49 = arith.addf %44, %48 : vector<2x24xf32>
    %50 = vector.extract_strided_slice %7 {offsets = [16, 0], sizes = [2, 64], strides = [1, 1]} : vector<72x64xf32> to vector<2x64xf32>
    %c8 = arith.constant 8 : index
    %c0_33 = arith.constant 0 : index
    %c0_34 = arith.constant 0 : index
    %51 = vector.load %arg4[%c8, %c0_33, %c0_34] : memref<36x64x24xf32, #tpu.memory_space<vmem>>, vector<1x64x24xf32>
    %52 = vector.shape_cast %51 : vector<1x64x24xf32> to vector<64x24xf32>
    %cst_35 = arith.constant dense<0.000000e+00> : vector<2x24xf32>
    %53 = tpu.matmul %50, %52, %cst_35 {dimension_numbers = #tpu.dot_dimension_numbers<[1], [0], [0], [1], [0, 0, 1, 1], [], []>} : vector<2x64xf32>, vector<64x24xf32>, vector<2x24xf32> -> vector<2x24xf32>
    %54 = arith.addf %49, %53 : vector<2x24xf32>
    %55 = vector.extract_strided_slice %7 {offsets = [18, 0], sizes = [2, 64], strides = [1, 1]} : vector<72x64xf32> to vector<2x64xf32>
    %c9 = arith.constant 9 : index
    %c0_36 = arith.constant 0 : index
    %c0_37 = arith.constant 0 : index
    %56 = vector.load %arg4[%c9, %c0_36, %c0_37] : memref<36x64x24xf32, #tpu.memory_space<vmem>>, vector<1x64x24xf32>
    %57 = vector.shape_cast %56 : vector<1x64x24xf32> to vector<64x24xf32>
    %cst_38 = arith.constant dense<0.000000e+00> : vector<2x24xf32>
    %58 = tpu.matmul %55, %57, %cst_38 {dimension_numbers = #tpu.dot_dimension_numbers<[1], [0], [0], [1], [0, 0, 1, 1], [], []>} : vector<2x64xf32>, vector<64x24xf32>, vector<2x24xf32> -> vector<2x24xf32>
    %59 = arith.addf %54, %58 : vector<2x24xf32>
    %60 = vector.extract_strided_slice %7 {offsets = [20, 0], sizes = [2, 64], strides = [1, 1]} : vector<72x64xf32> to vector<2x64xf32>
    %c10 = arith.constant 10 : index
    %c0_39 = arith.constant 0 : index
    %c0_40 = arith.constant 0 : index
    %61 = vector.load %arg4[%c10, %c0_39, %c0_40] : memref<36x64x24xf32, #tpu.memory_space<vmem>>, vector<1x64x24xf32>
    %62 = vector.shape_cast %61 : vector<1x64x24xf32> to vector<64x24xf32>
    %cst_41 = arith.constant dense<0.000000e+00> : vector<2x24xf32>
    %63 = tpu.matmul %60, %62, %cst_41 {dimension_numbers = #tpu.dot_dimension_numbers<[1], [0], [0], [1], [0, 0, 1, 1], [], []>} : vector<2x64xf32>, vector<64x24xf32>, vector<2x24xf32> -> vector<2x24xf32>
    %64 = arith.addf %59, %63 : vector<2x24xf32>
    %65 = vector.extract_strided_slice %7 {offsets = [22, 0], sizes = [2, 64], strides = [1, 1]} : vector<72x64xf32> to vector<2x64xf32>
    %c11 = arith.constant 11 : index
    %c0_42 = arith.constant 0 : index
    %c0_43 = arith.constant 0 : index
    %66 = vector.load %arg4[%c11, %c0_42, %c0_43] : memref<36x64x24xf32, #tpu.memory_space<vmem>>, vector<1x64x24xf32>
    %67 = vector.shape_cast %66 : vector<1x64x24xf32> to vector<64x24xf32>
    %cst_44 = arith.constant dense<0.000000e+00> : vector<2x24xf32>
    %68 = tpu.matmul %65, %67, %cst_44 {dimension_numbers = #tpu.dot_dimension_numbers<[1], [0], [0], [1], [0, 0, 1, 1], [], []>} : vector<2x64xf32>, vector<64x24xf32>, vector<2x24xf32> -> vector<2x24xf32>
    %69 = arith.addf %64, %68 : vector<2x24xf32>
    %70 = vector.extract_strided_slice %7 {offsets = [24, 0], sizes = [2, 64], strides = [1, 1]} : vector<72x64xf32> to vector<2x64xf32>
    %c12 = arith.constant 12 : index
    %c0_45 = arith.constant 0 : index
    %c0_46 = arith.constant 0 : index
    %71 = vector.load %arg4[%c12, %c0_45, %c0_46] : memref<36x64x24xf32, #tpu.memory_space<vmem>>, vector<1x64x24xf32>
    %72 = vector.shape_cast %71 : vector<1x64x24xf32> to vector<64x24xf32>
    %cst_47 = arith.constant dense<0.000000e+00> : vector<2x24xf32>
    %73 = tpu.matmul %70, %72, %cst_47 {dimension_numbers = #tpu.dot_dimension_numbers<[1], [0], [0], [1], [0, 0, 1, 1], [], []>} : vector<2x64xf32>, vector<64x24xf32>, vector<2x24xf32> -> vector<2x24xf32>
    %74 = arith.addf %69, %73 : vector<2x24xf32>
    %75 = vector.extract_strided_slice %7 {offsets = [26, 0], sizes = [2, 64], strides = [1, 1]} : vector<72x64xf32> to vector<2x64xf32>
    %c13 = arith.constant 13 : index
    %c0_48 = arith.constant 0 : index
    %c0_49 = arith.constant 0 : index
    %76 = vector.load %arg4[%c13, %c0_48, %c0_49] : memref<36x64x24xf32, #tpu.memory_space<vmem>>, vector<1x64x24xf32>
    %77 = vector.shape_cast %76 : vector<1x64x24xf32> to vector<64x24xf32>
    %cst_50 = arith.constant dense<0.000000e+00> : vector<2x24xf32>
    %78 = tpu.matmul %75, %77, %cst_50 {dimension_numbers = #tpu.dot_dimension_numbers<[1], [0], [0], [1], [0, 0, 1, 1], [], []>} : vector<2x64xf32>, vector<64x24xf32>, vector<2x24xf32> -> vector<2x24xf32>
    %79 = arith.addf %74, %78 : vector<2x24xf32>
    %80 = vector.extract_strided_slice %7 {offsets = [28, 0], sizes = [2, 64], strides = [1, 1]} : vector<72x64xf32> to vector<2x64xf32>
    %c14 = arith.constant 14 : index
    %c0_51 = arith.constant 0 : index
    %c0_52 = arith.constant 0 : index
    %81 = vector.load %arg4[%c14, %c0_51, %c0_52] : memref<36x64x24xf32, #tpu.memory_space<vmem>>, vector<1x64x24xf32>
    %82 = vector.shape_cast %81 : vector<1x64x24xf32> to vector<64x24xf32>
    %cst_53 = arith.constant dense<0.000000e+00> : vector<2x24xf32>
    %83 = tpu.matmul %80, %82, %cst_53 {dimension_numbers = #tpu.dot_dimension_numbers<[1], [0], [0], [1], [0, 0, 1, 1], [], []>} : vector<2x64xf32>, vector<64x24xf32>, vector<2x24xf32> -> vector<2x24xf32>
    %84 = arith.addf %79, %83 : vector<2x24xf32>
    %85 = vector.extract_strided_slice %7 {offsets = [30, 0], sizes = [2, 64], strides = [1, 1]} : vector<72x64xf32> to vector<2x64xf32>
    %c15 = arith.constant 15 : index
    %c0_54 = arith.constant 0 : index
    %c0_55 = arith.constant 0 : index
    %86 = vector.load %arg4[%c15, %c0_54, %c0_55] : memref<36x64x24xf32, #tpu.memory_space<vmem>>, vector<1x64x24xf32>
    %87 = vector.shape_cast %86 : vector<1x64x24xf32> to vector<64x24xf32>
    %cst_56 = arith.constant dense<0.000000e+00> : vector<2x24xf32>
    %88 = tpu.matmul %85, %87, %cst_56 {dimension_numbers = #tpu.dot_dimension_numbers<[1], [0], [0], [1], [0, 0, 1, 1], [], []>} : vector<2x64xf32>, vector<64x24xf32>, vector<2x24xf32> -> vector<2x24xf32>
    %89 = arith.addf %84, %88 : vector<2x24xf32>
    %90 = vector.extract_strided_slice %7 {offsets = [32, 0], sizes = [2, 64], strides = [1, 1]} : vector<72x64xf32> to vector<2x64xf32>
    %c16 = arith.constant 16 : index
    %c0_57 = arith.constant 0 : index
    %c0_58 = arith.constant 0 : index
    %91 = vector.load %arg4[%c16, %c0_57, %c0_58] : memref<36x64x24xf32, #tpu.memory_space<vmem>>, vector<1x64x24xf32>
    %92 = vector.shape_cast %91 : vector<1x64x24xf32> to vector<64x24xf32>
    %cst_59 = arith.constant dense<0.000000e+00> : vector<2x24xf32>
    %93 = tpu.matmul %90, %92, %cst_59 {dimension_numbers = #tpu.dot_dimension_numbers<[1], [0], [0], [1], [0, 0, 1, 1], [], []>} : vector<2x64xf32>, vector<64x24xf32>, vector<2x24xf32> -> vector<2x24xf32>
    %94 = arith.addf %89, %93 : vector<2x24xf32>
    %95 = vector.extract_strided_slice %7 {offsets = [34, 0], sizes = [2, 64], strides = [1, 1]} : vector<72x64xf32> to vector<2x64xf32>
    %c17 = arith.constant 17 : index
    %c0_60 = arith.constant 0 : index
    %c0_61 = arith.constant 0 : index
    %96 = vector.load %arg4[%c17, %c0_60, %c0_61] : memref<36x64x24xf32, #tpu.memory_space<vmem>>, vector<1x64x24xf32>
    %97 = vector.shape_cast %96 : vector<1x64x24xf32> to vector<64x24xf32>
    %cst_62 = arith.constant dense<0.000000e+00> : vector<2x24xf32>
    %98 = tpu.matmul %95, %97, %cst_62 {dimension_numbers = #tpu.dot_dimension_numbers<[1], [0], [0], [1], [0, 0, 1, 1], [], []>} : vector<2x64xf32>, vector<64x24xf32>, vector<2x24xf32> -> vector<2x24xf32>
    %99 = arith.addf %94, %98 : vector<2x24xf32>
    %100 = vector.extract_strided_slice %7 {offsets = [36, 0], sizes = [2, 64], strides = [1, 1]} : vector<72x64xf32> to vector<2x64xf32>
    %c18 = arith.constant 18 : index
    %c0_63 = arith.constant 0 : index
    %c0_64 = arith.constant 0 : index
    %101 = vector.load %arg4[%c18, %c0_63, %c0_64] : memref<36x64x24xf32, #tpu.memory_space<vmem>>, vector<1x64x24xf32>
    %102 = vector.shape_cast %101 : vector<1x64x24xf32> to vector<64x24xf32>
    %cst_65 = arith.constant dense<0.000000e+00> : vector<2x24xf32>
    %103 = tpu.matmul %100, %102, %cst_65 {dimension_numbers = #tpu.dot_dimension_numbers<[1], [0], [0], [1], [0, 0, 1, 1], [], []>} : vector<2x64xf32>, vector<64x24xf32>, vector<2x24xf32> -> vector<2x24xf32>
    %104 = arith.addf %99, %103 : vector<2x24xf32>
    %105 = vector.extract_strided_slice %7 {offsets = [38, 0], sizes = [2, 64], strides = [1, 1]} : vector<72x64xf32> to vector<2x64xf32>
    %c19 = arith.constant 19 : index
    %c0_66 = arith.constant 0 : index
    %c0_67 = arith.constant 0 : index
    %106 = vector.load %arg4[%c19, %c0_66, %c0_67] : memref<36x64x24xf32, #tpu.memory_space<vmem>>, vector<1x64x24xf32>
    %107 = vector.shape_cast %106 : vector<1x64x24xf32> to vector<64x24xf32>
    %cst_68 = arith.constant dense<0.000000e+00> : vector<2x24xf32>
    %108 = tpu.matmul %105, %107, %cst_68 {dimension_numbers = #tpu.dot_dimension_numbers<[1], [0], [0], [1], [0, 0, 1, 1], [], []>} : vector<2x64xf32>, vector<64x24xf32>, vector<2x24xf32> -> vector<2x24xf32>
    %109 = arith.addf %104, %108 : vector<2x24xf32>
    %110 = vector.extract_strided_slice %7 {offsets = [40, 0], sizes = [2, 64], strides = [1, 1]} : vector<72x64xf32> to vector<2x64xf32>
    %c20 = arith.constant 20 : index
    %c0_69 = arith.constant 0 : index
    %c0_70 = arith.constant 0 : index
    %111 = vector.load %arg4[%c20, %c0_69, %c0_70] : memref<36x64x24xf32, #tpu.memory_space<vmem>>, vector<1x64x24xf32>
    %112 = vector.shape_cast %111 : vector<1x64x24xf32> to vector<64x24xf32>
    %cst_71 = arith.constant dense<0.000000e+00> : vector<2x24xf32>
    %113 = tpu.matmul %110, %112, %cst_71 {dimension_numbers = #tpu.dot_dimension_numbers<[1], [0], [0], [1], [0, 0, 1, 1], [], []>} : vector<2x64xf32>, vector<64x24xf32>, vector<2x24xf32> -> vector<2x24xf32>
    %114 = arith.addf %109, %113 : vector<2x24xf32>
    %115 = vector.extract_strided_slice %7 {offsets = [42, 0], sizes = [2, 64], strides = [1, 1]} : vector<72x64xf32> to vector<2x64xf32>
    %c21 = arith.constant 21 : index
    %c0_72 = arith.constant 0 : index
    %c0_73 = arith.constant 0 : index
    %116 = vector.load %arg4[%c21, %c0_72, %c0_73] : memref<36x64x24xf32, #tpu.memory_space<vmem>>, vector<1x64x24xf32>
    %117 = vector.shape_cast %116 : vector<1x64x24xf32> to vector<64x24xf32>
    %cst_74 = arith.constant dense<0.000000e+00> : vector<2x24xf32>
    %118 = tpu.matmul %115, %117, %cst_74 {dimension_numbers = #tpu.dot_dimension_numbers<[1], [0], [0], [1], [0, 0, 1, 1], [], []>} : vector<2x64xf32>, vector<64x24xf32>, vector<2x24xf32> -> vector<2x24xf32>
    %119 = arith.addf %114, %118 : vector<2x24xf32>
    %120 = vector.extract_strided_slice %7 {offsets = [44, 0], sizes = [2, 64], strides = [1, 1]} : vector<72x64xf32> to vector<2x64xf32>
    %c22 = arith.constant 22 : index
    %c0_75 = arith.constant 0 : index
    %c0_76 = arith.constant 0 : index
    %121 = vector.load %arg4[%c22, %c0_75, %c0_76] : memref<36x64x24xf32, #tpu.memory_space<vmem>>, vector<1x64x24xf32>
    %122 = vector.shape_cast %121 : vector<1x64x24xf32> to vector<64x24xf32>
    %cst_77 = arith.constant dense<0.000000e+00> : vector<2x24xf32>
    %123 = tpu.matmul %120, %122, %cst_77 {dimension_numbers = #tpu.dot_dimension_numbers<[1], [0], [0], [1], [0, 0, 1, 1], [], []>} : vector<2x64xf32>, vector<64x24xf32>, vector<2x24xf32> -> vector<2x24xf32>
    %124 = arith.addf %119, %123 : vector<2x24xf32>
    %125 = vector.extract_strided_slice %7 {offsets = [46, 0], sizes = [2, 64], strides = [1, 1]} : vector<72x64xf32> to vector<2x64xf32>
    %c23 = arith.constant 23 : index
    %c0_78 = arith.constant 0 : index
    %c0_79 = arith.constant 0 : index
    %126 = vector.load %arg4[%c23, %c0_78, %c0_79] : memref<36x64x24xf32, #tpu.memory_space<vmem>>, vector<1x64x24xf32>
    %127 = vector.shape_cast %126 : vector<1x64x24xf32> to vector<64x24xf32>
    %cst_80 = arith.constant dense<0.000000e+00> : vector<2x24xf32>
    %128 = tpu.matmul %125, %127, %cst_80 {dimension_numbers = #tpu.dot_dimension_numbers<[1], [0], [0], [1], [0, 0, 1, 1], [], []>} : vector<2x64xf32>, vector<64x24xf32>, vector<2x24xf32> -> vector<2x24xf32>
    %129 = arith.addf %124, %128 : vector<2x24xf32>
    %130 = vector.extract_strided_slice %7 {offsets = [48, 0], sizes = [2, 64], strides = [1, 1]} : vector<72x64xf32> to vector<2x64xf32>
    %c24 = arith.constant 24 : index
    %c0_81 = arith.constant 0 : index
    %c0_82 = arith.constant 0 : index
    %131 = vector.load %arg4[%c24, %c0_81, %c0_82] : memref<36x64x24xf32, #tpu.memory_space<vmem>>, vector<1x64x24xf32>
    %132 = vector.shape_cast %131 : vector<1x64x24xf32> to vector<64x24xf32>
    %cst_83 = arith.constant dense<0.000000e+00> : vector<2x24xf32>
    %133 = tpu.matmul %130, %132, %cst_83 {dimension_numbers = #tpu.dot_dimension_numbers<[1], [0], [0], [1], [0, 0, 1, 1], [], []>} : vector<2x64xf32>, vector<64x24xf32>, vector<2x24xf32> -> vector<2x24xf32>
    %134 = arith.addf %129, %133 : vector<2x24xf32>
    %135 = vector.extract_strided_slice %7 {offsets = [50, 0], sizes = [2, 64], strides = [1, 1]} : vector<72x64xf32> to vector<2x64xf32>
    %c25 = arith.constant 25 : index
    %c0_84 = arith.constant 0 : index
    %c0_85 = arith.constant 0 : index
    %136 = vector.load %arg4[%c25, %c0_84, %c0_85] : memref<36x64x24xf32, #tpu.memory_space<vmem>>, vector<1x64x24xf32>
    %137 = vector.shape_cast %136 : vector<1x64x24xf32> to vector<64x24xf32>
    %cst_86 = arith.constant dense<0.000000e+00> : vector<2x24xf32>
    %138 = tpu.matmul %135, %137, %cst_86 {dimension_numbers = #tpu.dot_dimension_numbers<[1], [0], [0], [1], [0, 0, 1, 1], [], []>} : vector<2x64xf32>, vector<64x24xf32>, vector<2x24xf32> -> vector<2x24xf32>
    %139 = arith.addf %134, %138 : vector<2x24xf32>
    %140 = vector.extract_strided_slice %7 {offsets = [52, 0], sizes = [2, 64], strides = [1, 1]} : vector<72x64xf32> to vector<2x64xf32>
    %c26 = arith.constant 26 : index
    %c0_87 = arith.constant 0 : index
    %c0_88 = arith.constant 0 : index
    %141 = vector.load %arg4[%c26, %c0_87, %c0_88] : memref<36x64x24xf32, #tpu.memory_space<vmem>>, vector<1x64x24xf32>
    %142 = vector.shape_cast %141 : vector<1x64x24xf32> to vector<64x24xf32>
    %cst_89 = arith.constant dense<0.000000e+00> : vector<2x24xf32>
    %143 = tpu.matmul %140, %142, %cst_89 {dimension_numbers = #tpu.dot_dimension_numbers<[1], [0], [0], [1], [0, 0, 1, 1], [], []>} : vector<2x64xf32>, vector<64x24xf32>, vector<2x24xf32> -> vector<2x24xf32>
    %144 = arith.addf %139, %143 : vector<2x24xf32>
    %145 = vector.extract_strided_slice %7 {offsets = [54, 0], sizes = [2, 64], strides = [1, 1]} : vector<72x64xf32> to vector<2x64xf32>
    %c27 = arith.constant 27 : index
    %c0_90 = arith.constant 0 : index
    %c0_91 = arith.constant 0 : index
    %146 = vector.load %arg4[%c27, %c0_90, %c0_91] : memref<36x64x24xf32, #tpu.memory_space<vmem>>, vector<1x64x24xf32>
    %147 = vector.shape_cast %146 : vector<1x64x24xf32> to vector<64x24xf32>
    %cst_92 = arith.constant dense<0.000000e+00> : vector<2x24xf32>
    %148 = tpu.matmul %145, %147, %cst_92 {dimension_numbers = #tpu.dot_dimension_numbers<[1], [0], [0], [1], [0, 0, 1, 1], [], []>} : vector<2x64xf32>, vector<64x24xf32>, vector<2x24xf32> -> vector<2x24xf32>
    %149 = arith.addf %144, %148 : vector<2x24xf32>
    %150 = vector.extract_strided_slice %7 {offsets = [56, 0], sizes = [2, 64], strides = [1, 1]} : vector<72x64xf32> to vector<2x64xf32>
    %c28 = arith.constant 28 : index
    %c0_93 = arith.constant 0 : index
    %c0_94 = arith.constant 0 : index
    %151 = vector.load %arg4[%c28, %c0_93, %c0_94] : memref<36x64x24xf32, #tpu.memory_space<vmem>>, vector<1x64x24xf32>
    %152 = vector.shape_cast %151 : vector<1x64x24xf32> to vector<64x24xf32>
    %cst_95 = arith.constant dense<0.000000e+00> : vector<2x24xf32>
    %153 = tpu.matmul %150, %152, %cst_95 {dimension_numbers = #tpu.dot_dimension_numbers<[1], [0], [0], [1], [0, 0, 1, 1], [], []>} : vector<2x64xf32>, vector<64x24xf32>, vector<2x24xf32> -> vector<2x24xf32>
    %154 = arith.addf %149, %153 : vector<2x24xf32>
    %155 = vector.extract_strided_slice %7 {offsets = [58, 0], sizes = [2, 64], strides = [1, 1]} : vector<72x64xf32> to vector<2x64xf32>
    %c29 = arith.constant 29 : index
    %c0_96 = arith.constant 0 : index
    %c0_97 = arith.constant 0 : index
    %156 = vector.load %arg4[%c29, %c0_96, %c0_97] : memref<36x64x24xf32, #tpu.memory_space<vmem>>, vector<1x64x24xf32>
    %157 = vector.shape_cast %156 : vector<1x64x24xf32> to vector<64x24xf32>
    %cst_98 = arith.constant dense<0.000000e+00> : vector<2x24xf32>
    %158 = tpu.matmul %155, %157, %cst_98 {dimension_numbers = #tpu.dot_dimension_numbers<[1], [0], [0], [1], [0, 0, 1, 1], [], []>} : vector<2x64xf32>, vector<64x24xf32>, vector<2x24xf32> -> vector<2x24xf32>
    %159 = arith.addf %154, %158 : vector<2x24xf32>
    %160 = vector.extract_strided_slice %7 {offsets = [60, 0], sizes = [2, 64], strides = [1, 1]} : vector<72x64xf32> to vector<2x64xf32>
    %c30 = arith.constant 30 : index
    %c0_99 = arith.constant 0 : index
    %c0_100 = arith.constant 0 : index
    %161 = vector.load %arg4[%c30, %c0_99, %c0_100] : memref<36x64x24xf32, #tpu.memory_space<vmem>>, vector<1x64x24xf32>
    %162 = vector.shape_cast %161 : vector<1x64x24xf32> to vector<64x24xf32>
    %cst_101 = arith.constant dense<0.000000e+00> : vector<2x24xf32>
    %163 = tpu.matmul %160, %162, %cst_101 {dimension_numbers = #tpu.dot_dimension_numbers<[1], [0], [0], [1], [0, 0, 1, 1], [], []>} : vector<2x64xf32>, vector<64x24xf32>, vector<2x24xf32> -> vector<2x24xf32>
    %164 = arith.addf %159, %163 : vector<2x24xf32>
    %165 = vector.extract_strided_slice %7 {offsets = [62, 0], sizes = [2, 64], strides = [1, 1]} : vector<72x64xf32> to vector<2x64xf32>
    %c31 = arith.constant 31 : index
    %c0_102 = arith.constant 0 : index
    %c0_103 = arith.constant 0 : index
    %166 = vector.load %arg4[%c31, %c0_102, %c0_103] : memref<36x64x24xf32, #tpu.memory_space<vmem>>, vector<1x64x24xf32>
    %167 = vector.shape_cast %166 : vector<1x64x24xf32> to vector<64x24xf32>
    %cst_104 = arith.constant dense<0.000000e+00> : vector<2x24xf32>
    %168 = tpu.matmul %165, %167, %cst_104 {dimension_numbers = #tpu.dot_dimension_numbers<[1], [0], [0], [1], [0, 0, 1, 1], [], []>} : vector<2x64xf32>, vector<64x24xf32>, vector<2x24xf32> -> vector<2x24xf32>
    %169 = arith.addf %164, %168 : vector<2x24xf32>
    %170 = vector.extract_strided_slice %7 {offsets = [64, 0], sizes = [2, 64], strides = [1, 1]} : vector<72x64xf32> to vector<2x64xf32>
    %c32 = arith.constant 32 : index
    %c0_105 = arith.constant 0 : index
    %c0_106 = arith.constant 0 : index
    %171 = vector.load %arg4[%c32, %c0_105, %c0_106] : memref<36x64x24xf32, #tpu.memory_space<vmem>>, vector<1x64x24xf32>
    %172 = vector.shape_cast %171 : vector<1x64x24xf32> to vector<64x24xf32>
    %cst_107 = arith.constant dense<0.000000e+00> : vector<2x24xf32>
    %173 = tpu.matmul %170, %172, %cst_107 {dimension_numbers = #tpu.dot_dimension_numbers<[1], [0], [0], [1], [0, 0, 1, 1], [], []>} : vector<2x64xf32>, vector<64x24xf32>, vector<2x24xf32> -> vector<2x24xf32>
    %174 = arith.addf %169, %173 : vector<2x24xf32>
    %175 = vector.extract_strided_slice %7 {offsets = [66, 0], sizes = [2, 64], strides = [1, 1]} : vector<72x64xf32> to vector<2x64xf32>
    %c33 = arith.constant 33 : index
    %c0_108 = arith.constant 0 : index
    %c0_109 = arith.constant 0 : index
    %176 = vector.load %arg4[%c33, %c0_108, %c0_109] : memref<36x64x24xf32, #tpu.memory_space<vmem>>, vector<1x64x24xf32>
    %177 = vector.shape_cast %176 : vector<1x64x24xf32> to vector<64x24xf32>
    %cst_110 = arith.constant dense<0.000000e+00> : vector<2x24xf32>
    %178 = tpu.matmul %175, %177, %cst_110 {dimension_numbers = #tpu.dot_dimension_numbers<[1], [0], [0], [1], [0, 0, 1, 1], [], []>} : vector<2x64xf32>, vector<64x24xf32>, vector<2x24xf32> -> vector<2x24xf32>
    %179 = arith.addf %174, %178 : vector<2x24xf32>
    %180 = vector.extract_strided_slice %7 {offsets = [68, 0], sizes = [2, 64], strides = [1, 1]} : vector<72x64xf32> to vector<2x64xf32>
    %c34 = arith.constant 34 : index
    %c0_111 = arith.constant 0 : index
    %c0_112 = arith.constant 0 : index
    %181 = vector.load %arg4[%c34, %c0_111, %c0_112] : memref<36x64x24xf32, #tpu.memory_space<vmem>>, vector<1x64x24xf32>
    %182 = vector.shape_cast %181 : vector<1x64x24xf32> to vector<64x24xf32>
    %cst_113 = arith.constant dense<0.000000e+00> : vector<2x24xf32>
    %183 = tpu.matmul %180, %182, %cst_113 {dimension_numbers = #tpu.dot_dimension_numbers<[1], [0], [0], [1], [0, 0, 1, 1], [], []>} : vector<2x64xf32>, vector<64x24xf32>, vector<2x24xf32> -> vector<2x24xf32>
    %184 = arith.addf %179, %183 : vector<2x24xf32>
    %185 = vector.extract_strided_slice %7 {offsets = [70, 0], sizes = [2, 64], strides = [1, 1]} : vector<72x64xf32> to vector<2x64xf32>
    %c35 = arith.constant 35 : index
    %c0_114 = arith.constant 0 : index
    %c0_115 = arith.constant 0 : index
    %186 = vector.load %arg4[%c35, %c0_114, %c0_115] : memref<36x64x24xf32, #tpu.memory_space<vmem>>, vector<1x64x24xf32>
    %187 = vector.shape_cast %186 : vector<1x64x24xf32> to vector<64x24xf32>
    %cst_116 = arith.constant dense<0.000000e+00> : vector<2x24xf32>
    %188 = tpu.matmul %185, %187, %cst_116 {dimension_numbers = #tpu.dot_dimension_numbers<[1], [0], [0], [1], [0, 0, 1, 1], [], []>} : vector<2x64xf32>, vector<64x24xf32>, vector<2x24xf32> -> vector<2x24xf32>
    %189 = arith.addf %184, %188 : vector<2x24xf32>
    %c0_117 = arith.constant 0 : index
    %c0_118 = arith.constant 0 : index
    %190 = vector.load %arg6[%c0_117, %c0_118] : memref<2x24xf32, #tpu.memory_space<vmem>>, vector<2x24xf32>
    tpu.vector_store %arg6[%c0_117, %c0_118], %189 {strides = array<i32>} : memref<2x24xf32, #tpu.memory_space<vmem>>, vector<2x24xf32>,
    return
  }
  func.func @transform_0(%arg0: i32) -> (i32, i32) {
    %c0_i32 = arith.constant 0 : i32
    %c0_i32_0 = arith.constant 0 : i32
    %c0_i32_1 = arith.constant 0 : i32
    return %c0_i32, %c0_i32_0 : i32, i32
  }
  func.func @transform_1(%arg0: i32) -> (i32, i32) {
    %c0_i32 = arith.constant 0 : i32
    %c0_i32_0 = arith.constant 0 : i32
    %c0_i32_1 = arith.constant 0 : i32
    return %c0_i32, %c0_i32_0 : i32, i32
  }
  func.func @transform_2(%arg0: i32) -> (i32, i32) {
    %c0_i32 = arith.constant 0 : i32
    %c0_i32_0 = arith.constant 0 : i32
    %c0_i32_1 = arith.constant 0 : i32
    return %c0_i32, %c0_i32_0 : i32, i32
  }
  func.func @transform_3(%arg0: i32) -> (i32, i32, i32) {
    %c0_i32 = arith.constant 0 : i32
    %c0_i32_0 = arith.constant 0 : i32
    %c0_i32_1 = arith.constant 0 : i32
    %c0_i32_2 = arith.constant 0 : i32
    return %c0_i32, %c0_i32_0, %c0_i32_1 : i32, i32, i32
  }
  func.func @transform_4(%arg0: i32) -> (i32, i32) {
    %c0_i32 = arith.constant 0 : i32
    %c0_i32_0 = arith.constant 0 : i32
    %c0_i32_1 = arith.constant 0 : i32
    return %c0_i32, %c0_i32_0 : i32, i32
  }
  func.func @transform_5(%arg0: i32) -> (i32, i32) {
    %c0_i32 = arith.constant 0 : i32
    %c0_i32_0 = arith.constant 0 : i32
    %c0_i32_1 = arith.constant 0 : i32
    return %c0_i32, %c0_i32_0 : i32, i32
  }
}

</mosaic_0001>

<bundles_post_ra>
// kernel: dy_cnn_forward.1
= control target key start
LH: loop header
LB: loop body
LE: loop exit
PB: predicated region body
PF: predicated region fallthrough
CT: control target
= control target key end

     0   :  { %v5368_v7 = vmov 0.0|0.0   ;;  %vm5369_vm0 = vmmov 0   ;;  %v5370_v8 = vmov 0.0   ;;  %s6849_s0 = inlined_call_operand.vmem [shape: f32[72,288], index: 0, kind: input, shape index: {}]   ;;  %s6850_s1 = inlined_call_operand.vmem [shape: f32[288,64], index: 1, kind: input, shape index: {}]   ;;  %s6851_s2 = inlined_call_operand.vmem [shape: f32[1,64], index: 2, kind: input, shape index: {}]   ;;  %s6852_s3 = inlined_call_operand.vmem [shape: f32[36,64,24], index: 3, kind: input, shape index: {}]   ;;  %s6853_s4 = inlined_call_operand.vmem [shape: f32[1,24], index: 4, kind: input, shape index: {}]   ;;  %s6854_s5 = inlined_call_operand.hbm [shape: f32[2,24], index: 5, kind: output, shape index: {}]  }
   0x1   :  { %v64_v0 = vld [vmem:[%s6850_s1 + $0x80] sm:$0xff]  ;;  %v65_v1 = vld [vmem:[%s6850_s1 + $0x88] sm:$0xff]  ;;  %v66_v5 = vld [vmem:[%s6850_s1 + $0x90] sm:$0xff]  ;;  %5018 = vmatprep.subr.bf16.mxu1 %v5368_v7  ;;  %4417 = vmatprep.mubr.msk.f32.mxu1 %vm5369_vm0, %v5370_v8 }
   0x2   :  { %v48_v2 = vld [vmem:[%s6850_s1] sm:$0xff]  ;;  %v4800_v3 = vpack.c.bf16 %v65_v1, %v64_v0  ;;  %v49_v4 = vld [vmem:[%s6850_s1 + $0x8] sm:$0xff]  ;;  %v67_v6 = vld [vmem:[%s6850_s1 + $0x98] sm:$0xff] }
   0x3   :  { %v4802_v9 = vpack.c.bf16 %v49_v4, %v48_v2  ;;  %v4804_v10 = vpack.c.bf16 %v67_v6, %v66_v5  ;;  %v50_v11 = vld [vmem:[%s6850_s1 + $0x10] sm:$0xff]  ;;  %v51_v12 = vld [vmem:[%s6850_s1 + $0x18] sm:$0xff]  ;;  %v68_v13 = vld [vmem:[%s6850_s1 + $0xa0] sm:$0xff] }
   0x4   :  { %4801 = vmatprep.subr.bf16.mxu0 %v4800_v3  ;;  %v69_v14 = vld [vmem:[%s6850_s1 + $0xa8] sm:$0xff]  ;;  %v4806_v15 = vpack.c.bf16 %v51_v12, %v50_v11  ;;  %v52_v17 = vld [vmem:[%s6850_s1 + $0x20] sm:$0xff]  ;;  %v70_v19 = vld [vmem:[%s6850_s1 + $0xb0] sm:$0xff] }
   0x5   :  { %4803 = vmatpush3.bf16.msra.mxu0 %v4802_v9  ;;  %v4808_v16 = vpack.c.bf16 %v69_v14, %v68_v13  ;;  %v53_v18 = vld [vmem:[%s6850_s1 + $0x28] sm:$0xff]  ;;  %v71_v20 = vld [vmem:[%s6850_s1 + $0xb8] sm:$0xff]  ;;  %v54_v23 = vld [vmem:[%s6850_s1 + $0x30] sm:$0xff] }
   0x6   :  { %4805 = vmatprep.subr.bf16.mxu0 %v4804_v10  ;;  %v4810_v21 = vpack.c.bf16 %v53_v18, %v52_v17  ;;  %v4812_v22 = vpack.c.bf16 %v71_v20, %v70_v19  ;;  %v55_v24 = vld [vmem:[%s6850_s1 + $0x38] sm:$0xff]  ;;  %v72_v25 = vld [vmem:[%s6850_s1 + $0xc0] sm:$0xff]  ;;  %v73_v26 = vld [vmem:[%s6850_s1 + $0xc8] sm:$0xff] }
   0x7   :  { %v22_v27 = vld [vmem:[%s6849_s0 + $0x8] sm:$0xff]  ;;  %v4814_v28 = vpack.c.bf16 %v55_v24, %v54_v23  ;;  %v4816_v29 = vpack.c.bf16 %v73_v26, %v72_v25  ;;  %v56_v30 = vld [vmem:[%s6850_s1 + $0x40] sm:$0xff]  ;;  %v74_v32 = vld [vmem:[%s6850_s1 + $0xd0] sm:$0xff] }
   0x8   :  { %183 = vmatprep.mubr.f32.mxu0 %v22_v27  ;;  %v57_v31 = vld [vmem:[%s6850_s1 + $0x48] sm:$0xff]  ;;  %v75_v33 = vld [vmem:[%s6850_s1 + $0xd8] sm:$0xff]  ;;  %v58_v36 = vld [vmem:[%s6850_s1 + $0x50] sm:$0xff] }
   0x9   :  { %4807 = vmatpush3.bf16.msra.mxu0 %v4806_v15  ;;  %v4818_v34 = vpack.c.bf16 %v57_v31, %v56_v30  ;;  %v4820_v35 = vpack.c.bf16 %v75_v33, %v74_v32  ;;  %v59_v37 = vld [vmem:[%s6850_s1 + $0x58] sm:$0xff]  ;;  %v76_v38 = vld [vmem:[%s6850_s1 + $0xe0] sm:$0xff]  ;;  %v77_v39 = vld [vmem:[%s6850_s1 + $0xe8] sm:$0xff] }
   0xa   :  { %4809 = vmatprep.subr.bf16.mxu0 %v4808_v16  ;;  %v4822_v40 = vpack.c.bf16 %v59_v37, %v58_v36  ;;  %v4824_v41 = vpack.c.bf16 %v77_v39, %v76_v38  ;;  %v60_v42 = vld [vmem:[%s6850_s1 + $0x60] sm:$0xff]  ;;  %v61_v43 = vld [vmem:[%s6850_s1 + $0x68] sm:$0xff] }
   0xd   :  { %4811 = vmatpush3.bf16.msra.mxu0 %v4810_v21 }
   0xe   :  { %4813 = vmatprep.subr.bf16.mxu0 %v4812_v22 }
  0x11   :  { %4815 = vmatpush3.bf16.msra.mxu0 %v4814_v28 }
  0x12   :  { %4817 = vmatprep.subr.bf16.mxu0 %v4816_v29 }
  0x15   :  { %4819 = vmatpush3.bf16.msra.mxu0 %v4818_v34 }
  0x16   :  { %4821 = vmatprep.subr.bf16.mxu0 %v4820_v35 }
  0x17   :  { %10 = vsyncpa [#allocation3], 0  ;;  %v78_v44 = vld [vmem:[%s6850_s1 + $0xf0] sm:$0xff]  ;;  %v79_v45 = vld [vmem:[%s6850_s1 + $0xf8] sm:$0xff]  ;;  %v4826_v46 = vpack.c.bf16 %v61_v43, %v60_v42  ;;  %vm91_vm1 = vcmask 261120   ;;  %vm363_vm2 = vcmask 523264  }
  0x18   :  { %v4828_v47 = vpack.c.bf16 %v79_v45, %v78_v44  ;;  %v62_v48 = vld [vmem:[%s6850_s1 + $0x70] sm:$0xff]  ;;  %v63_v49 = vld [vmem:[%s6850_s1 + $0x78] sm:$0xff]  ;;  %v80_v51 = vld [vmem:[%s6850_s1 + $0x100] sm:$0xff]  ;;  %s5371_s10 = smov [#allocation2]   ;;  %vm3342_vm3 = vcmask 189440  }
  0x19   :  { %4823 = vmatpush3.bf16.msra.mxu0 %v4822_v40  ;;  %v4830_v50 = vpack.c.bf16 %v63_v49, %v62_v48  ;;  %v81_v52 = vld [vmem:[%s6850_s1 + $0x108] sm:$0xff]  ;;  %v21_v53 = vld [vmem:[%s6849_s0] sm:$0xff]  ;;  %v82_v56 = vld [vmem:[%s6850_s1 + $0x110] sm:$0xff]  ;;  %s3350_s11 = sshll.u32 %s5371_s10, 4  ;;  %s3351_s11 = int_to_ptr.vmem [resolvable:$true] %s3350_s11 }
  0x1a   :  { %4825 = vmatprep.subr.bf16.mxu0 %v4824_v41  ;;  %v4833_v54 = vpack.c.bf16 %v81_v52, %v80_v51  ;;  %v25_v55 = vld [vmem:[%s6849_s0 + $0x20] sm:$0xff]  ;;  %v83_v57 = vld [vmem:[%s6850_s1 + $0x118] sm:$0xff]  ;;  %v27_v61 = vld [vmem:[%s6849_s0 + $0x30] sm:$0xff]  ;;  %p5349_p1 = scmp.lt.s32.totalorder %s3351_s11, %s3351_s11 }
  0x1b   :  { %v24_v58 = vld [vmem:[%s6849_s0 + $0x18] sm:$0xff]  ;;  %v4836_v59 = vpack.c.bf16 %v83_v57, %v82_v56  ;;  %v31_v62 = vld [vmem:[%s6849_s0 + $0x50] sm:$0xff]  ;;  %v30_v63 = vld [vmem:[%s6849_s0 + $0x48] sm:$0xff] }
  0x1c   :  { %v28_v60 = vld [vmem:[%s6849_s0 + $0x38] sm:$0xff]  ;;  %v34_v0 = vld [vmem:[%s6849_s0 + $0x68] sm:$0xff]  ;;  %v33_v1 = vld [vmem:[%s6849_s0 + $0x60] sm:$0xff] }
  0x1d   :  { %4827 = vmatpush3.bf16.msra.mxu0 %v4826_v46  ;;  %v37_v2 = vld [vmem:[%s6849_s0 + $0x80] sm:$0xff]  ;;  %v36_v3 = vld [vmem:[%s6849_s0 + $0x78] sm:$0xff]  ;;  %v39_v5 = vld [vmem:[%s6849_s0 + $0x90] sm:$0xff] }
  0x1e   :  { %4829 = vmatprep.subr.bf16.mxu0 %v4828_v47  ;;  %v40_v4 = vld [vmem:[%s6849_s0 + $0x98] sm:$0xff]  ;;  %v43_v6 = vld [vmem:[%s6849_s0 + $0xb0] sm:$0xff]  ;;  %v42_v9 = vld [vmem:[%s6849_s0 + $0xa8] sm:$0xff] }
  0x1f   :  { %v46_v10 = vld [vmem:[%s6849_s0 + $0xc8] sm:$0xff]  ;;  %v45_v11 = vld [vmem:[%s6849_s0 + $0xc0] sm:$0xff]  ;;  %v23_v12 = vld [vmem:[%s6849_s0 + $0x10] sm:$0xff] }
  0x20   :  { %v26_v13 = vld [vmem:[%s6849_s0 + $0x28] sm:$0xff]  ;;  %v29_v14 = vld [vmem:[%s6849_s0 + $0x40] sm:$0xff]  ;;  %v32_v15 = vld [vmem:[%s6849_s0 + $0x58] sm:$0xff] }
  0x21   :  { %4831 = vmatpush3.bf16.msra.mxu0 %v4830_v50  ;;  %v35_v16 = vld [vmem:[%s6849_s0 + $0x70] sm:$0xff]  ;;  %v38_v17 = vld [vmem:[%s6849_s0 + $0x88] sm:$0xff]  ;;  %v41_v18 = vld [vmem:[%s6849_s0 + $0xa0] sm:$0xff] }
  0x22   :  { %4832 = vmatprep.subr.bf16.mxu0 %v5368_v7  ;;  %v44_v19 = vld [vmem:[%s6849_s0 + $0xb8] sm:$0xff]  ;;  %v47_v20 = vld [vmem:[%s6849_s0 + $0xd0] sm:$0xff]  ;;  %v348_v21 = vld [vmem:[%s6852_s3] sm:$0xff] }
  0x23   :  { %v349_v22 = vld [vmem:[%s6852_s3 + $0x8] sm:$0xff]  ;;  %v350_v24 = vld [vmem:[%s6852_s3 + $0x10] sm:$0xff]  ;;  %v351_v25 = vld [vmem:[%s6852_s3 + $0x18] sm:$0xff] }
  0x24   :  { %184 = vmatmul.mubr.f32.vlgmr.msra.gmra.mrb[0].mxu0 %v21_v53  ;;  %v4839_v23 = vpack.c.bf16 %v349_v22, %v348_v21  ;;  %v4842_v26 = vpack.c.bf16 %v351_v25, %v350_v24  ;;  %v352_v27 = vld [vmem:[%s6852_s3 + $0x20] sm:$0xff]  ;;  %v353_v28 = vld [vmem:[%s6852_s3 + $0x28] sm:$0xff]  ;;  %v354_v30 = vld [vmem:[%s6852_s3 + $0x30] sm:$0xff] }
  0x25   :  { %4834 = vmatpush3.bf16.msra.mxu0 %v4833_v54  ;;  %188 = vmatprep.mubr.f32.mxu0 %v25_v55  ;;  %v4845_v29 = vpack.c.bf16 %v353_v28, %v352_v27  ;;  %v355_v31 = vld [vmem:[%s6852_s3 + $0x38] sm:$0xff]  ;;  %v3496_v33 = vld [vmem:[%s6852_s3 + $0x3c0] sm:$0xff]  ;;  %v3497_v34 = vld [vmem:[%s6852_s3 + $0x3c8] sm:$0xff] }
  0x26   :  { %4835 = vmatprep.subr.bf16.mxu0 %v5368_v7  ;;  %v4848_v32 = vpack.c.bf16 %v355_v31, %v354_v30  ;;  %v5019_v35 = vpack.c.bf16 %v3497_v34, %v3496_v33  ;;  %v3498_v36 = vld [vmem:[%s6852_s3 + $0x3d0] sm:$0xff]  ;;  %v3499_v37 = vld [vmem:[%s6852_s3 + $0x3d8] sm:$0xff]  ;;  %v3500_v39 = vld [vmem:[%s6852_s3 + $0x3e0] sm:$0xff] }
  0x27   :  { %v5022_v38 = vpack.c.bf16 %v3499_v37, %v3498_v36  ;;  %v3501_v40 = vld [vmem:[%s6852_s3 + $0x3e8] sm:$0xff]  ;;  %v3502_v42 = vld [vmem:[%s6852_s3 + $0x3f0] sm:$0xff]  ;;  %v3503_v43 = vld [vmem:[%s6852_s3 + $0x3f8] sm:$0xff] }
  0x28   :  { %189 = vmatmul.mubr.f32.gmra.mrb[2].mxu0 %v24_v58  ;;  %5020 = vmatpush3.bf16.msra.mxu1 %v5019_v35  ;;  %v5025_v41 = vpack.c.bf16 %v3501_v40, %v3500_v39  ;;  %v5028_v44 = vpack.c.bf16 %v3503_v43, %v3502_v42  ;;  %v5685_v51 = vld [vmem:[%s6851_s2] ss:$0 sm:$0xff]  ;;  %v3372_v25 = vld [vmem:[%s6852_s3 + $0x50] sm:$0xff]  ;;  %v3377_v39 = vld [vmem:[%s6852_s3 + $0x78] sm:$0xff] }
  0x29   :  { %193 = vmatprep.mubr.f32.mxu0 %v28_v60  ;;  %4837 = vmatpush3.bf16.msra.mxu0 %v4836_v59  ;;  %v3374_v31 = vld [vmem:[%s6852_s3 + $0x60] sm:$0xff] }
  0x2a   :  { %4838 = vmatprep.subr.bf16.mxu0 %v5368_v7  ;;  %5021 = vmatprep.subr.bf16.mxu1 %v5368_v7  ;;  %v3505_v43 = vld [vmem:[%s6852_s3 + $0x400] sm:$0xff] }
  0x2c   :  { %194 = vmatmul.mubr.f32.gmra.mrb[4].mxu0 %v27_v61  ;;  %5023 = vmatpush3.bf16.msra.mxu1 %v5022_v38  ;;  %v3376_v38 = vld [vmem:[%s6852_s3 + $0x70] sm:$0xff] }
  0x2d   :  { %198 = vmatprep.mubr.f32.mxu0 %v31_v62  ;;  %5024 = vmatprep.subr.bf16.mxu1 %v5368_v7 }
  0x30   :  { %199 = vmatmul.mubr.f32.gmra.mrb[6].mxu0 %v30_v63  ;;  %5026 = vmatpush3.bf16.msra.mxu1 %v5025_v41 }
  0x31   :  { %203 = vmatprep.mubr.f32.mxu0 %v34_v0  ;;  %5027 = vmatprep.subr.bf16.mxu1 %v5368_v7 }
  0x34   :  { %204 = vmatmul.mubr.f32.gmra.mrb[8].mxu0 %v33_v1  ;;  %5029 = vmatpush3.bf16.msra.mxu1 %v5028_v44  ;;  %v3506_v44 = vld [vmem:[%s6852_s3 + $0x408] sm:$0xff] }
  0x35   :  { %208 = vmatprep.mubr.f32.mxu0 %v37_v2  ;;  %5030 = vmatprep.subr.bf16.mxu1 %v5368_v7 }
  0x38   :  { %209 = vmatmul.mubr.f32.gmra.mrb[10].mxu0 %v36_v3 }
  0x39   :  { %213 = vmatprep.mubr.f32.mxu0 %v40_v4 }
  0x3c   :  { %214 = vmatmul.mubr.f32.gmra.mrb[12].mxu0 %v39_v5 }
  0x3d   :  { %218 = vmatprep.mubr.f32.mxu0 %v43_v6 }
  0x40   :  { %219 = vmatmul.mubr.f32.gmra.mrb[14].mxu0 %v42_v9 }
  0x41   :  { %223 = vmatprep.mubr.f32.mxu0 %v46_v10 }
  0x44   :  { %224 = vmatmul.mubr.f32.gmra.mrb[16].mxu0 %v45_v11 }
  0x45   :  { %4089 = vmatprep.mubr.msk.f32.mxu0 %vm5369_vm0, %v5370_v8 }
  0x48   :  { %4090 = vmatmul.mubr.msk.f32.vlgmr.msra.gmra.mrb[18].mxu0 %vm91_vm1, %v23_v12 }
  0x49   :  { %4092 = vmatprep.mubr.msk.f32.mxu0 %vm5369_vm0, %v5370_v8  ;;  %4840 = vmatpush3.bf16.msra.mxu0 %v4839_v23 }
  0x4a   :  { %4841 = vmatprep.subr.bf16.mxu0 %v5368_v7 }
  0x4c   :  { %4093 = vmatmul.mubr.msk.f32.gmra.mrb[20].mxu0 %vm91_vm1, %v26_v13 }
  0x4d   :  { %4095 = vmatprep.mubr.msk.f32.mxu0 %vm5369_vm0, %v5370_v8  ;;  %4843 = vmatpush3.bf16.msra.mxu0 %v4842_v26  ;;  %v3373_v26 = vld [vmem:[%s6852_s3 + $0x58] sm:$0xff] }
  0x4e   :  { %4844 = vmatprep.subr.bf16.mxu0 %v5368_v7  ;;  %v4854_v30 = vpack.c.bf16 %v3373_v26, %v3372_v25  ;;  %v3515_v25 = vld [vmem:[%s6852_s3 + $0x448] sm:$0xff] }
  0x50   :  { %4096 = vmatmul.mubr.msk.f32.gmra.mrb[22].mxu0 %vm91_vm1, %v29_v14 }
  0x51   :  { %4098 = vmatprep.mubr.msk.f32.mxu0 %vm5369_vm0, %v5370_v8  ;;  %4846 = vmatpush3.bf16.msra.mxu0 %v4845_v29 }
  0x52   :  { %4847 = vmatprep.subr.bf16.mxu0 %v5368_v7 }
  0x54   :  { %4099 = vmatmul.mubr.msk.f32.gmra.mrb[24].mxu0 %vm91_vm1, %v32_v15 }
  0x55   :  { %4101 = vmatprep.mubr.msk.f32.mxu0 %vm5369_vm0, %v5370_v8  ;;  %4849 = vmatpush3.bf16.msra.mxu0 %v4848_v32  ;;  %v3375_v32 = vld [vmem:[%s6852_s3 + $0x68] sm:$0xff] }
  0x56   :  { %4850 = vmatprep.subr.bf16.mxu0 %v5368_v7  ;;  %v4857_v36 = vpack.c.bf16 %v3375_v32, %v3374_v31 }
  0x58   :  { %4102 = vmatmul.mubr.msk.f32.gmra.mrb[26].mxu0 %vm91_vm1, %v35_v16 }
  0x59   :  { %4104 = vmatprep.mubr.msk.f32.mxu0 %vm5369_vm0, %v5370_v8 }
  0x5c   :  { %4105 = vmatmul.mubr.msk.f32.gmra.mrb[28].mxu0 %vm91_vm1, %v38_v17  ;;  %v3370_v17 = vld [vmem:[%s6852_s3 + $0x40] sm:$0xff] }
  0x5d   :  { %4107 = vmatprep.mubr.msk.f32.mxu0 %vm5369_vm0, %v5370_v8 }
  0x60   :  { %4108 = vmatmul.mubr.msk.f32.gmra.mrb[30].mxu0 %vm91_vm1, %v41_v18  ;;  %v3371_v18 = vld [vmem:[%s6852_s3 + $0x48] sm:$0xff] }
  0x61   :  { %4110 = vmatprep.mubr.msk.f32.mxu0 %vm5369_vm0, %v5370_v8  ;;  %v4851_v23 = vpack.c.bf16 %v3371_v18, %v3370_v17  ;;  %v3386_v17 = vld [vmem:[%s6852_s3 + $0xb8] sm:$0xff] }
  0x64   :  { %4111 = vmatmul.mubr.msk.f32.gmra.mrb[32].mxu0 %vm91_vm1, %v44_v19 }
  0x65   :  { %4113 = vmatprep.mubr.msk.f32.mxu0 %vm5369_vm0, %v5370_v8 }
  0x68   :  { %4114 = vmatmul.mubr.msk.f32.gmra.mrb[34].mxu0 %vm91_vm1, %v47_v20 }
  0x69   :  { %4132 = vmatprep.mubr.msk.f32.mxu0 %vm5369_vm0, %v5370_v8 }
  0xf7   :  { %v3717_v45 = vpop.f32.mrb[0].mxu0 }
  0xf8   :  { %v3718_v46 = vpop.f32.mrb[1].mxu0 }
  0xf9   :  { %v3719_v47 = vadd.f32 %v3718_v46, %v3717_v45  ;;  %v4860_v45 = vpack.c.bf16 %v3377_v39, %v3376_v38  ;;  %v3391_v39 = vld [vmem:[%s6852_s3 + $0xd8] sm:$0xff] }
  0xfb   :  { %v3720_v48 = vpop.f32.mrb[2].mxu0  ;;  %v186_v16 = vadd.f32 %v3719_v47, %v5685_v51 }
  0xfc   :  { %v3721_v49 = vpop.f32.mrb[3].mxu0 }
  0xfd   :  { %v3722_v50 = vadd.f32 %v3721_v49, %v3720_v48  ;;  %v3379_v48 = vld [vmem:[%s6852_s3 + $0x80] sm:$0xff]  ;;  %v3380_v49 = vld [vmem:[%s6852_s3 + $0x88] sm:$0xff] }
  0xff   :  { %v3723_v52 = vpop.f32.mrb[4].mxu0  ;;  %v191_v53 = vadd.f32 %v3722_v50, %v5685_v51 }
 0x100   :  { %v3724_v54 = vpop.f32.mrb[5].mxu0 }
 0x101   :  { %v3725_v55 = vadd.f32 %v3724_v54, %v3723_v52  ;;  %v5031_v52 = vpack.c.bf16 %v3506_v44, %v3505_v43  ;;  %v3392_v44 = vld [vmem:[%s6852_s3 + $0xe0] sm:$0xff] }
 0x103   :  { %v3726_v56 = vpop.f32.mrb[6].mxu0  ;;  %v196_v57 = vadd.f32 %v3725_v55, %v5685_v51 }
 0x104   :  { %v3727_v58 = vpop.f32.mrb[7].mxu0 }
 0x105   :  { %v3728_v59 = vadd.f32 %v3727_v58, %v3726_v56  ;;  %v3508_v56 = vld [vmem:[%s6852_s3 + $0x418] sm:$0xff] }
 0x107   :  { %v3729_v60 = vpop.f32.mrb[8].mxu0  ;;  %v201_v37 = vadd.f32 %v3728_v59, %v5685_v51  ;;  %v3381_v59 = vld [vmem:[%s6852_s3 + $0x90] sm:$0xff] }
 0x108   :  { %v3730_v61 = vpop.f32.mrb[9].mxu0 }
 0x109   :  { %v3731_v62 = vadd.f32 %v3730_v61, %v3729_v60  ;;  %v3382_v60 = vld [vmem:[%s6852_s3 + $0x98] sm:$0xff] }
 0x10b   :  { %v3732_v63 = vpop.f32.mrb[10].mxu0  ;;  %v206_v47 = vadd.f32 %v3731_v62, %v5685_v51 }
 0x10c   :  { %v3733_v0 = vpop.f32.mrb[11].mxu0 }
 0x10d   :  { %v3734_v1 = vadd.f32 %v3733_v0, %v3732_v63 }
 0x10f   :  { %v3735_v2 = vpop.f32.mrb[12].mxu0  ;;  %v5690_v3 = vadd.f32 %v3734_v1, %v5685_v51  ;;  %v3509_v1 = vld [vmem:[%s6852_s3 + $0x420] sm:$0xff] }
 0x110   :  { %v3736_v4 = vpop.f32.mrb[13].mxu0 }
 0x111   :  { %v3737_v5 = vadd.f32 %v3736_v4, %v3735_v2  ;;  %v3510_v2 = vld [vmem:[%s6852_s3 + $0x428] sm:$0xff]  ;;  %v4866_v4 = vpack.c.bf16 %v3382_v60, %v3381_v59 }
 0x113   :  { %v3738_v6 = vpop.f32.mrb[14].mxu0  ;;  %v5693_v9 = vadd.f32 %v3737_v5, %v5685_v51  ;;  %v3384_v5 = vld [vmem:[%s6852_s3 + $0xa8] sm:$0xff] }
 0x114   :  { %v3739_v10 = vpop.f32.mrb[15].mxu0 }
 0x115   :  { %v3740_v11 = vadd.f32 %v3739_v10, %v3738_v6  ;;  %v5037_v10 = vpack.c.bf16 %v3510_v2, %v3509_v1  ;;  %v3399_v2 = vld [vmem:[%s6852_s3 + $0x110] sm:$0xff] }
 0x117   :  { %v3741_v12 = vpop.f32.mrb[16].mxu0  ;;  %v5696_v13 = vadd.f32 %v3740_v11, %v5685_v51 }
 0x118   :  { %v3742_v14 = vpop.f32.mrb[17].mxu0 }
 0x119   :  { %v3743_v15 = vadd.f32 %v3742_v14, %v3741_v12  ;;  %v3511_v14 = vld [vmem:[%s6852_s3 + $0x430] sm:$0xff] }
 0x11b   :  { %v295_v19 = vpop.f32.mrb[18].mxu0  ;;  %v5706_v20 = vadd.f32 %v3743_v15, %v5685_v51  ;;  %v3507_v51 = vld [vmem:[%s6852_s3 + $0x410] sm:$0xff]  ;;  %v3512_v15 = vld [vmem:[%s6852_s3 + $0x438] sm:$0xff] }
 0x11c   :  { %v296_v21 = vadd.f32 %v295_v19, %v186_v16  ;;  %v4091_v22 = vpop.f32.mrb[19].mxu0  ;;  %v5034_v62 = vpack.c.bf16 %v3508_v56, %v3507_v51  ;;  %v5040_v19 = vpack.c.bf16 %v3512_v15, %v3511_v14  ;;  %v3524_v51 = vld [vmem:[%s6852_s3 + $0x488] sm:$0xff]  ;;  %v3529_v15 = vld [vmem:[%s6852_s3 + $0x4b0] sm:$0xff] }
 0x11e   :  { %v5708_v24 = vmax.f32 %v296_v21, 0.0 }
 0x11f   :  { %v300_v27 = vpop.f32.mrb[20].mxu0 }
 0x120   :  { %v5716_v28 = vadd.f32 %v300_v27, %v191_v53  ;;  %v4094_v29 = vpop.f32.mrb[21].mxu0  ;;  %4133 = vmatmul.mubr.msk.f32.vlgmr.msra.gmra.mrb[36].mxu0 %vm363_vm2, %v5708_v24  ;;  %v446_v58 = vrot.slane %v5708_v24, 2  ;;  %v3389_v27 = vld [vmem:[%s6852_s3 + $0xc8] sm:$0xff]  ;;  %v529_v38 = vrot.slane %v5708_v24, 4  ;;  %v612_v1 = vrot.slane %v5708_v24, 6  ;;  %v3527_v24 = vld [vmem:[%s6852_s3 + $0x4a0] sm:$0xff] }
 0x121   :  { %4852 = vmatpush3.bf16.msra.mxu0 %v4851_v23  ;;  %4151 = vmatprep.mubr.msk.f32.mxu0 %vm5369_vm0, %v5370_v8  ;;  %v3514_v23 = vld [vmem:[%s6852_s3 + $0x440] sm:$0xff] }
 0x122   :  { %4853 = vmatprep.subr.bf16.mxu0 %v5368_v7 }
 0x123   :  { %v305_v33 = vpop.f32.mrb[22].mxu0 }
 0x124   :  { %v5729_v34 = vadd.f32 %v305_v33, %v196_v57  ;;  %v4097_v35 = vpop.f32.mrb[23].mxu0  ;;  %v4863_v57 = vpack.c.bf16 %v3380_v49, %v3379_v48  ;;  %v3516_v33 = vld [vmem:[%s6852_s3 + $0x450] sm:$0xff]  ;;  %v3521_v49 = vld [vmem:[%s6852_s3 + $0x478] sm:$0xff] }
 0x125   :  { %4855 = vmatpush3.bf16.msra.mxu0 %v4854_v30  ;;  %v5043_v30 = vpack.c.bf16 %v3515_v25, %v3514_v23  ;;  %v3517_v35 = vld [vmem:[%s6852_s3 + $0x458] sm:$0xff]  ;;  %v3520_v48 = vld [vmem:[%s6852_s3 + $0x470] sm:$0xff]  ;;  %v3533_v23 = vld [vmem:[%s6852_s3 + $0x4c8] sm:$0xff] }
 0x126   :  { %4856 = vmatprep.subr.bf16.mxu0 %v5368_v7 }
 0x127   :  { %v310_v40 = vpop.f32.mrb[24].mxu0 }
 0x128   :  { %v311_v41 = vadd.f32 %v310_v40, %v201_v37  ;;  %v4100_v42 = vpop.f32.mrb[25].mxu0  ;;  %v5046_v40 = vpack.c.bf16 %v3517_v35, %v3516_v33  ;;  %v3535_v33 = vld [vmem:[%s6852_s3 + $0x4d8] sm:$0xff] }
 0x129   :  { %4858 = vmatpush3.bf16.msra.mxu0 %v4857_v36  ;;  %v3519_v42 = vld [vmem:[%s6852_s3 + $0x468] sm:$0xff] }
 0x12a   :  { %v5745_v46 = vmax.f32 %v311_v41, 0.0  ;;  %4859 = vmatprep.subr.bf16.mxu0 %v5368_v7  ;;  %v3518_v41 = vld [vmem:[%s6852_s3 + $0x460] sm:$0xff] }
 0x12b   :  { %v315_v50 = vpop.f32.mrb[26].mxu0 }
 0x12c   :  { %v316_v53 = vadd.f32 %v315_v50, %v206_v47  ;;  %v4103_v54 = vpop.f32.mrb[27].mxu0  ;;  %v1608_v55 = vrot.slane %v5745_v46, 6  ;;  %v5049_v47 = vpack.c.bf16 %v3519_v42, %v3518_v41  ;;  %v3410_v41 = vld [vmem:[%s6852_s3 + $0x160] sm:$0xff]  ;;  %v3411_v42 = vld [vmem:[%s6852_s3 + $0x168] sm:$0xff] }
 0x12d   :  { %4861 = vmatpush3.bf16.msra.mxu0 %v4860_v45  ;;  %v3393_v45 = vld [vmem:[%s6852_s3 + $0xe8] sm:$0xff]  ;;  %v5052_v54 = vpack.c.bf16 %v3521_v49, %v3520_v48  ;;  %v3412_v48 = vld [vmem:[%s6852_s3 + $0x170] sm:$0xff]  ;;  %v3413_v49 = vld [vmem:[%s6852_s3 + $0x178] sm:$0xff] }
 0x12e   :  { %4418 = vmatmul.mubr.msk.f32.vlgmr.msra.gmra.mrb[0].mxu1 %vm363_vm2, %v1608_v55  ;;  %4862 = vmatprep.subr.bf16.mxu0 %v5368_v7  ;;  %v5827_v31 = vmax.f32 %v316_v53, 0.0  ;;  %v4881_v50 = vpack.c.bf16 %v3393_v45, %v3392_v44  ;;  %v3395_v53 = vld [vmem:[%s6852_s3 + $0xf8] sm:$0xff]  ;;  %v3523_v55 = vld [vmem:[%s6852_s3 + $0x480] sm:$0xff]  ;;  %v3538_v44 = vld [vmem:[%s6852_s3 + $0x4f0] sm:$0xff] }
 0x12f   :  { %5032 = vmatpush3.bf16.msra.mxu1 %v5031_v52  ;;  %v320_v61 = vpop.f32.mrb[28].mxu0  ;;  %4436 = vmatprep.mubr.msk.f32.mxu1 %vm5369_vm0, %v5370_v8  ;;  %v3394_v52 = vld [vmem:[%s6852_s3 + $0xf0] sm:$0xff]  ;;  %v5055_v59 = vpack.c.bf16 %v3524_v51, %v3523_v55  ;;  %v3539_v45 = vld [vmem:[%s6852_s3 + $0x4f8] sm:$0xff]  ;;  %v3415_v55 = vld [vmem:[%s6852_s3 + $0x180] sm:$0xff] }
 0x130   :  { %v5774_v63 = vadd.f32 %v320_v61, %v5690_v3  ;;  %4152 = vmatmul.mubr.msk.f32.vlgmr.msra.gmra.mrb[36].mxu0 %vm363_vm2, %v446_v58  ;;  %5033 = vmatprep.subr.bf16.mxu1 %v5368_v7  ;;  %v4106_v0 = vpop.f32.mrb[29].mxu0  ;;  %v3383_v3 = vld [vmem:[%s6852_s3 + $0xa0] sm:$0xff]  ;;  %v4884_v56 = vpack.c.bf16 %v3395_v53, %v3394_v52  ;;  %v3398_v58 = vld [vmem:[%s6852_s3 + $0x108] sm:$0xff]  ;;  %v1774_v60 = vrot.slane %v5827_v31, 2  ;;  %v3525_v61 = vld [vmem:[%s6852_s3 + $0x490] sm:$0xff] }
 0x131   :  { %4864 = vmatpush3.bf16.msra.mxu0 %v4863_v57  ;;  %4170 = vmatprep.mubr.msk.f32.mxu0 %vm5369_vm0, %v5370_v8  ;;  %v4869_v16 = vpack.c.bf16 %v3384_v5, %v3383_v3  ;;  %v3397_v57 = vld [vmem:[%s6852_s3 + $0x100] sm:$0xff]  ;;  %v3528_v5 = vld [vmem:[%s6852_s3 + $0x4a8] sm:$0xff] }
 0x132   :  { %4865 = vmatprep.subr.bf16.mxu0 %v5368_v7  ;;  %v4887_v0 = vpack.c.bf16 %v3398_v58, %v3397_v57  ;;  %v5061_v14 = vpack.c.bf16 %v3528_v5, %v3527_v24  ;;  %v3541_v52 = vld [vmem:[%s6852_s3 + $0x500] sm:$0xff]  ;;  %v3542_v53 = vld [vmem:[%s6852_s3 + $0x508] sm:$0xff]  ;;  %v1940_v57 = vrot.slane %v5827_v31, 6  ;;  %v3543_v58 = vld [vmem:[%s6852_s3 + $0x510] sm:$0xff] }
 0x133   :  { %5035 = vmatpush3.bf16.msra.mxu1 %v5034_v62  ;;  %v325_v6 = vpop.f32.mrb[30].mxu0  ;;  %v3526_v62 = vld [vmem:[%s6852_s3 + $0x498] sm:$0xff]  ;;  %v3416_v51 = vld [vmem:[%s6852_s3 + $0x188] sm:$0xff] }
 0x134   :  { %v5794_v11 = vadd.f32 %v325_v6, %v5693_v9  ;;  %5036 = vmatprep.subr.bf16.mxu1 %v5368_v7  ;;  %v4109_v12 = vpop.f32.mrb[31].mxu0  ;;  %v3385_v9 = vld [vmem:[%s6852_s3 + $0xb0] sm:$0xff]  ;;  %v5058_v3 = vpack.c.bf16 %v3526_v62, %v3525_v61  ;;  %v3418_v62 = vld [vmem:[%s6852_s3 + $0x198] sm:$0xff]  ;;  %v3420_v24 = vld [vmem:[%s6852_s3 + $0x1a8] sm:$0xff] }
 0x135   :  { %4867 = vmatpush3.bf16.msra.mxu0 %v4866_v4  ;;  %v4872_v26 = vpack.c.bf16 %v3386_v17, %v3385_v9  ;;  %v3400_v4 = vld [vmem:[%s6852_s3 + $0x118] sm:$0xff]  ;;  %v3402_v12 = vld [vmem:[%s6852_s3 + $0x128] sm:$0xff]  ;;  %v3403_v17 = vld [vmem:[%s6852_s3 + $0x130] sm:$0xff] }
 0x136   :  { %4868 = vmatprep.subr.bf16.mxu0 %v5368_v7  ;;  %v4890_v6 = vpack.c.bf16 %v3400_v4, %v3399_v2  ;;  %v3546_v2 = vld [vmem:[%s6852_s3 + $0x528] sm:$0xff] }
 0x137   :  { %5038 = vmatpush3.bf16.msra.mxu1 %v5037_v10  ;;  %v330_v18 = vpop.f32.mrb[32].mxu0  ;;  %v3401_v10 = vld [vmem:[%s6852_s3 + $0x120] sm:$0xff] }
 0x138   :  { %v5811_v21 = vadd.f32 %v330_v18, %v5696_v13  ;;  %5039 = vmatprep.subr.bf16.mxu1 %v5368_v7  ;;  %v4112_v22 = vpop.f32.mrb[33].mxu0  ;;  %v3388_v13 = vld [vmem:[%s6852_s3 + $0xc0] sm:$0xff]  ;;  %v4893_v9 = vpack.c.bf16 %v3402_v12, %v3401_v10  ;;  %v3404_v18 = vld [vmem:[%s6852_s3 + $0x138] sm:$0xff] }
 0x139   :  { %4870 = vmatpush3.bf16.msra.mxu0 %v4869_v16  ;;  %v4875_v37 = vpack.c.bf16 %v3389_v27, %v3388_v13  ;;  %v3530_v16 = vld [vmem:[%s6852_s3 + $0x4b8] sm:$0xff]  ;;  %v3532_v22 = vld [vmem:[%s6852_s3 + $0x4c0] sm:$0xff]  ;;  %v4896_v25 = vpack.c.bf16 %v3404_v18, %v3403_v17  ;;  %v3407_v13 = vld [vmem:[%s6852_s3 + $0x148] sm:$0xff] }
 0x13a   :  { %4871 = vmatprep.subr.bf16.mxu0 %v5368_v7  ;;  %v5067_v27 = vpack.c.bf16 %v3533_v23, %v3532_v22  ;;  %v3548_v10 = vld [vmem:[%s6852_s3 + $0x538] sm:$0xff]  ;;  %v3551_v17 = vld [vmem:[%s6852_s3 + $0x548] sm:$0xff] }
 0x13b   :  { %5041 = vmatpush3.bf16.msra.mxu1 %v5040_v19  ;;  %v335_v29 = vpop.f32.mrb[34].mxu0  ;;  %v5064_v19 = vpack.c.bf16 %v3530_v16, %v3529_v15  ;;  %v3422_v15 = vld [vmem:[%s6852_s3 + $0x1b8] sm:$0xff]  ;;  %v3425_v22 = vld [vmem:[%s6852_s3 + $0x1c8] sm:$0xff] }
 0x13c   :  { %v5830_v32 = vadd.f32 %v335_v29, %v5706_v20  ;;  %5042 = vmatprep.subr.bf16.mxu1 %v5368_v7  ;;  %v4115_v36 = vpop.f32.mrb[35].mxu0  ;;  %v3390_v20 = vld [vmem:[%s6852_s3 + $0xd0] sm:$0xff]  ;;  %v1857_v29 = vrot.slane %v5827_v31, 4 }
 0x13d   :  { %4873 = vmatpush3.bf16.msra.mxu0 %v4872_v26  ;;  %v4878_v43 = vpack.c.bf16 %v3391_v39, %v3390_v20  ;;  %v3406_v26 = vld [vmem:[%s6852_s3 + $0x140] sm:$0xff]  ;;  %v5969_v36 = vmax.f32 %v5716_v28, 0.0  ;;  %v3537_v39 = vld [vmem:[%s6852_s3 + $0x4e8] sm:$0xff] }
 0x13e   :  { %4437 = vmatmul.mubr.msk.f32.vlgmr.msra.gmra.mrb[0].mxu1 %vm363_vm2, %v5827_v31  ;;  %4874 = vmatprep.subr.bf16.mxu0 %v5368_v7  ;;  %v4899_v35 = vpack.c.bf16 %v3407_v13, %v3406_v26  ;;  %v3536_v28 = vld [vmem:[%s6852_s3 + $0x4e0] sm:$0xff]  ;;  %v3417_v31 = vld [vmem:[%s6852_s3 + $0x190] sm:$0xff]  ;;  %v3553_v13 = vld [vmem:[%s6852_s3 + $0x558] sm:$0xff] }
 0x13f   :  { %5044 = vmatpush3.bf16.msra.mxu1 %v5043_v30  ;;  %4455 = vmatprep.mubr.msk.f32.mxu1 %vm5369_vm0, %v5370_v8  ;;  %v3534_v30 = vld [vmem:[%s6852_s3 + $0x4d0] sm:$0xff]  ;;  %v778_v61 = vrot.slane %v5969_v36, 2  ;;  %v4914_v4 = vpack.c.bf16 %v3418_v62, %v3417_v31  ;;  %v3437_v62 = vld [vmem:[%s6852_s3 + $0x220] sm:$0xff] }
 0x140   :  { %4171 = vmatmul.mubr.msk.f32.vlgmr.msra.gmra.mrb[36].mxu0 %vm363_vm2, %v529_v38  ;;  %5045 = vmatprep.subr.bf16.mxu1 %v5368_v7  ;;  %v3409_v38 = vld [vmem:[%s6852_s3 + $0x158] sm:$0xff]  ;;  %v5070_v20 = vpack.c.bf16 %v3535_v33, %v3534_v30  ;;  %v3552_v26 = vld [vmem:[%s6852_s3 + $0x550] sm:$0xff] }
 0x141   :  { %4876 = vmatpush3.bf16.msra.mxu0 %v4875_v37  ;;  %4189 = vmatprep.mubr.msk.f32.mxu0 %vm5369_vm0, %v5370_v8  ;;  %v3408_v37 = vld [vmem:[%s6852_s3 + $0x150] sm:$0xff]  ;;  %v3427_v30 = vld [vmem:[%s6852_s3 + $0x1d8] sm:$0xff]  ;;  %v5094_v33 = vpack.c.bf16 %v3553_v13, %v3552_v26 }
 0x142   :  { %4877 = vmatprep.subr.bf16.mxu0 %v5368_v7  ;;  %v3444_v26 = vld [vmem:[%s6852_s3 + $0x250] sm:$0xff]  ;;  %v3445_v13 = vld [vmem:[%s6852_s3 + $0x258] sm:$0xff] }
 0x143   :  { %5047 = vmatpush3.bf16.msra.mxu1 %v5046_v40  ;;  %v4902_v40 = vpack.c.bf16 %v3409_v38, %v3408_v37  ;;  %v3555_v37 = vld [vmem:[%s6852_s3 + $0x568] sm:$0xff] }
 0x144   :  { %5048 = vmatprep.subr.bf16.mxu1 %v5368_v7 }
 0x145   :  { %4879 = vmatpush3.bf16.msra.mxu0 %v4878_v43  ;;  %v5073_v43 = vpack.c.bf16 %v3537_v39, %v3536_v28  ;;  %v3429_v28 = vld [vmem:[%s6852_s3 + $0x1e8] sm:$0xff] }
 0x146   :  { %4880 = vmatprep.subr.bf16.mxu0 %v5368_v7 }
 0x147   :  { %5050 = vmatpush3.bf16.msra.mxu1 %v5049_v47  ;;  %v4905_v47 = vpack.c.bf16 %v3411_v42, %v3410_v41  ;;  %v3557_v41 = vld [vmem:[%s6852_s3 + $0x578] sm:$0xff] }
 0x148   :  { %5051 = vmatprep.subr.bf16.mxu1 %v5368_v7 }
 0x149   :  { %4882 = vmatpush3.bf16.msra.mxu0 %v4881_v50  ;;  %v5076_v50 = vpack.c.bf16 %v3539_v45, %v3538_v44  ;;  %v3431_v44 = vld [vmem:[%s6852_s3 + $0x1f8] sm:$0xff] }
 0x14a   :  { %4883 = vmatprep.subr.bf16.mxu0 %v5368_v7 }
 0x14b   :  { %5053 = vmatpush3.bf16.msra.mxu1 %v5052_v54  ;;  %v4908_v54 = vpack.c.bf16 %v3413_v49, %v3412_v48  ;;  %v3560_v48 = vld [vmem:[%s6852_s3 + $0x588] sm:$0xff] }
 0x14c   :  { %5054 = vmatprep.subr.bf16.mxu1 %v5368_v7 }
 0x14d   :  { %4885 = vmatpush3.bf16.msra.mxu0 %v4884_v56  ;;  %v5079_v56 = vpack.c.bf16 %v3542_v53, %v3541_v52  ;;  %v3434_v52 = vld [vmem:[%s6852_s3 + $0x208] sm:$0xff] }
 0x14e   :  { %4456 = vmatmul.mubr.msk.f32.vlgmr.msra.gmra.mrb[0].mxu1 %vm363_vm2, %v1774_v60  ;;  %4886 = vmatprep.subr.bf16.mxu0 %v5368_v7  ;;  %v4911_v60 = vpack.c.bf16 %v3416_v51, %v3415_v55  ;;  %v3561_v55 = vld [vmem:[%s6852_s3 + $0x590] sm:$0xff]  ;;  %v3562_v51 = vld [vmem:[%s6852_s3 + $0x598] sm:$0xff] }
 0x14f   :  { %5056 = vmatpush3.bf16.msra.mxu1 %v5055_v59  ;;  %4474 = vmatprep.mubr.msk.f32.mxu1 %vm5369_vm0, %v5370_v8  ;;  %v3544_v59 = vld [vmem:[%s6852_s3 + $0x518] sm:$0xff] }
 0x150   :  { %4190 = vmatmul.mubr.msk.f32.vlgmr.msra.gmra.mrb[36].mxu0 %vm363_vm2, %v612_v1  ;;  %5057 = vmatprep.subr.bf16.mxu1 %v5368_v7  ;;  %v3545_v1 = vld [vmem:[%s6852_s3 + $0x520] sm:$0xff] }
 0x151   :  { %4888 = vmatpush3.bf16.msra.mxu0 %v4887_v0  ;;  %4208 = vmatprep.mubr.msk.f32.mxu0 %vm5369_vm0, %v5370_v8  ;;  %v5082_v0 = vpack.c.bf16 %v3544_v59, %v3543_v58  ;;  %v5085_v5 = vpack.c.bf16 %v3546_v2, %v3545_v1  ;;  %v3435_v58 = vld [vmem:[%s6852_s3 + $0x210] sm:$0xff]  ;;  %v3436_v59 = vld [vmem:[%s6852_s3 + $0x218] sm:$0xff] }
 0x152   :  { %4889 = vmatprep.subr.bf16.mxu0 %v5368_v7  ;;  %v4938_v31 = vpack.c.bf16 %v3436_v59, %v3435_v58  ;;  %v3565_v2 = vld [vmem:[%s6852_s3 + $0x5b0] sm:$0xff]  ;;  %v3455_v58 = vld [vmem:[%s6852_s3 + $0x2a0] sm:$0xff]  ;;  %v3456_v59 = vld [vmem:[%s6852_s3 + $0x2a8] sm:$0xff] }
 0x153   :  { %5059 = vmatpush3.bf16.msra.mxu1 %v5058_v3  ;;  %v3419_v3 = vld [vmem:[%s6852_s3 + $0x1a0] sm:$0xff] }
 0x154   :  { %5060 = vmatprep.subr.bf16.mxu1 %v5368_v7  ;;  %v4917_v12 = vpack.c.bf16 %v3420_v24, %v3419_v3  ;;  %v3439_v24 = vld [vmem:[%s6852_s3 + $0x230] sm:$0xff] }
 0x155   :  { %4891 = vmatpush3.bf16.msra.mxu0 %v4890_v6  ;;  %v3547_v6 = vld [vmem:[%s6852_s3 + $0x530] sm:$0xff] }
 0x156   :  { %4892 = vmatprep.subr.bf16.mxu0 %v5368_v7  ;;  %v5088_v16 = vpack.c.bf16 %v3548_v10, %v3547_v6  ;;  %v3568_v10 = vld [vmem:[%s6852_s3 + $0x5c0] sm:$0xff] }
 0x157   :  { %5062 = vmatpush3.bf16.msra.mxu1 %v5061_v14  ;;  %v3421_v14 = vld [vmem:[%s6852_s3 + $0x1b0] sm:$0xff] }
 0x158   :  { %5063 = vmatprep.subr.bf16.mxu1 %v5368_v7  ;;  %v4920_v18 = vpack.c.bf16 %v3422_v15, %v3421_v14  ;;  %v3442_v15 = vld [vmem:[%s6852_s3 + $0x240] sm:$0xff] }
 0x159   :  { %4894 = vmatpush3.bf16.msra.mxu0 %v4893_v9  ;;  %v3550_v9 = vld [vmem:[%s6852_s3 + $0x540] sm:$0xff] }
 0x15a   :  { %4895 = vmatprep.subr.bf16.mxu0 %v5368_v7  ;;  %v5091_v23 = vpack.c.bf16 %v3551_v17, %v3550_v9 }
 0x15b   :  { %5065 = vmatpush3.bf16.msra.mxu1 %v5064_v19  ;;  %v3424_v19 = vld [vmem:[%s6852_s3 + $0x1c0] sm:$0xff] }
 0x15c   :  { %5066 = vmatprep.subr.bf16.mxu1 %v5368_v7 }
 0x15d   :  { %4897 = vmatpush3.bf16.msra.mxu0 %v4896_v25  ;;  %v6092_v25 = vmax.f32 %v5774_v63, 0.0  ;;  %v3426_v63 = vld [vmem:[%s6852_s3 + $0x1d0] sm:$0xff] }
 0x15e   :  { %4475 = vmatmul.mubr.msk.f32.vlgmr.msra.gmra.mrb[0].mxu1 %vm363_vm2, %v1857_v29  ;;  %4898 = vmatprep.subr.bf16.mxu0 %v5368_v7  ;;  %v861_v29 = vrot.slane %v5969_v36, 4  ;;  %v4926_v38 = vpack.c.bf16 %v3427_v30, %v3426_v63  ;;  %v4950_v63 = vpack.c.bf16 %v3445_v13, %v3444_v26  ;;  %v3446_v30 = vld [vmem:[%s6852_s3 + $0x260] sm:$0xff]  ;;  %v3465_v13 = vld [vmem:[%s6852_s3 + $0x2e8] sm:$0xff] }
 0x15f   :  { %5068 = vmatpush3.bf16.msra.mxu1 %v5067_v27  ;;  %4493 = vmatprep.mubr.msk.f32.mxu1 %vm5369_vm0, %v5370_v8  ;;  %v4923_v27 = vpack.c.bf16 %v3425_v22, %v3424_v19  ;;  %v2189_v17 = vrot.slane %v6092_v25, 4  ;;  %v3571_v19 = vld [vmem:[%s6852_s3 + $0x5d8] sm:$0xff]  ;;  %v3464_v26 = vld [vmem:[%s6852_s3 + $0x2e0] sm:$0xff] }
 0x160   :  { %4209 = vmatmul.mubr.msk.f32.vlgmr.msra.gmra.mrb[36].mxu0 %vm363_vm2, %v5969_v36  ;;  %5069 = vmatprep.subr.bf16.mxu1 %v5368_v7 }
 0x161   :  { %4900 = vmatpush3.bf16.msra.mxu0 %v4899_v35  ;;  %4227 = vmatprep.mubr.msk.f32.mxu0 %vm5369_vm0, %v5370_v8  ;;  %v3554_v35 = vld [vmem:[%s6852_s3 + $0x560] sm:$0xff] }
 0x162   :  { %4901 = vmatprep.subr.bf16.mxu0 %v5368_v7  ;;  %v5097_v39 = vpack.c.bf16 %v3555_v37, %v3554_v35  ;;  %v3574_v37 = vld [vmem:[%s6852_s3 + $0x5f0] sm:$0xff] }
 0x163   :  { %5071 = vmatpush3.bf16.msra.mxu1 %v5070_v20  ;;  %v3428_v20 = vld [vmem:[%s6852_s3 + $0x1e0] sm:$0xff] }
 0x164   :  { %5072 = vmatprep.subr.bf16.mxu1 %v5368_v7  ;;  %v4929_v42 = vpack.c.bf16 %v3429_v28, %v3428_v20  ;;  %v3448_v28 = vld [vmem:[%s6852_s3 + $0x270] sm:$0xff] }
 0x165   :  { %4903 = vmatpush3.bf16.msra.mxu0 %v4902_v40  ;;  %v3556_v40 = vld [vmem:[%s6852_s3 + $0x570] sm:$0xff] }
 0x166   :  { %4904 = vmatprep.subr.bf16.mxu0 %v5368_v7  ;;  %v5100_v45 = vpack.c.bf16 %v3557_v41, %v3556_v40  ;;  %v3577_v41 = vld [vmem:[%s6852_s3 + $0x600] sm:$0xff] }
 0x167   :  { %5074 = vmatpush3.bf16.msra.mxu1 %v5073_v43  ;;  %v3430_v43 = vld [vmem:[%s6852_s3 + $0x1f0] sm:$0xff] }
 0x168   :  { %5075 = vmatprep.subr.bf16.mxu1 %v5368_v7  ;;  %v4932_v49 = vpack.c.bf16 %v3431_v44, %v3430_v43  ;;  %v3451_v44 = vld [vmem:[%s6852_s3 + $0x280] sm:$0xff] }
 0x169   :  { %4906 = vmatpush3.bf16.msra.mxu0 %v4905_v47  ;;  %v3559_v47 = vld [vmem:[%s6852_s3 + $0x580] sm:$0xff] }
 0x16a   :  { %4907 = vmatprep.subr.bf16.mxu0 %v5368_v7  ;;  %v5103_v53 = vpack.c.bf16 %v3560_v48, %v3559_v47  ;;  %v2272_v48 = vrot.slane %v6092_v25, 6 }
 0x16b   :  { %5077 = vmatpush3.bf16.msra.mxu1 %v5076_v50  ;;  %v3433_v50 = vld [vmem:[%s6852_s3 + $0x200] sm:$0xff] }
 0x16c   :  { %5078 = vmatprep.subr.bf16.mxu1 %v5368_v7 }
 0x16d   :  { %4909 = vmatpush3.bf16.msra.mxu0 %v4908_v54  ;;  %v2106_v54 = vrot.slane %v6092_v25, 2 }
 0x16e   :  { %4494 = vmatmul.mubr.msk.f32.vlgmr.msra.gmra.mrb[0].mxu1 %vm363_vm2, %v1940_v57  ;;  %4910 = vmatprep.subr.bf16.mxu0 %v5368_v7  ;;  %v944_v57 = vrot.slane %v5969_v36, 6  ;;  %v3563_v36 = vld [vmem:[%s6852_s3 + $0x5a0] sm:$0xff] }
 0x16f   :  { %5080 = vmatpush3.bf16.msra.mxu1 %v5079_v56  ;;  %4512 = vmatprep.mubr.msk.f32.mxu1 %vm5369_vm0, %v5370_v8  ;;  %v4935_v56 = vpack.c.bf16 %v3434_v52, %v3433_v50  ;;  %v3580_v50 = vld [vmem:[%s6852_s3 + $0x618] sm:$0xff] }
 0x170   :  { %4228 = vmatmul.mubr.msk.f32.vlgmr.msra.gmra.mrb[36].mxu0 %vm363_vm2, %v778_v61  ;;  %5081 = vmatprep.subr.bf16.mxu1 %v5368_v7  ;;  %v3564_v61 = vld [vmem:[%s6852_s3 + $0x5a8] sm:$0xff] }
 0x171   :  { %4912 = vmatpush3.bf16.msra.mxu0 %v4911_v60  ;;  %4246 = vmatprep.mubr.msk.f32.mxu0 %vm5369_vm0, %v5370_v8  ;;  %v5106_v60 = vpack.c.bf16 %v3562_v51, %v3561_v55  ;;  %v5109_v1 = vpack.c.bf16 %v3564_v61, %v3563_v36  ;;  %v3581_v51 = vld [vmem:[%s6852_s3 + $0x620] sm:$0xff]  ;;  %v3583_v36 = vld [vmem:[%s6852_s3 + $0x630] sm:$0xff]  ;;  %v3584_v61 = vld [vmem:[%s6852_s3 + $0x638] sm:$0xff] }
 0x172   :  { %4913 = vmatprep.subr.bf16.mxu0 %v5368_v7 }
 0x173   :  { %5083 = vmatpush3.bf16.msra.mxu1 %v5082_v0  ;;  %v3438_v0 = vld [vmem:[%s6852_s3 + $0x228] sm:$0xff] }
 0x174   :  { %5084 = vmatprep.subr.bf16.mxu1 %v5368_v7  ;;  %v4941_v3 = vpack.c.bf16 %v3438_v0, %v3437_v62  ;;  %v3457_v62 = vld [vmem:[%s6852_s3 + $0x2b0] sm:$0xff]  ;;  %v3458_v0 = vld [vmem:[%s6852_s3 + $0x2b8] sm:$0xff] }
 0x175   :  { %4915 = vmatpush3.bf16.msra.mxu0 %v4914_v4  ;;  %v3566_v4 = vld [vmem:[%s6852_s3 + $0x5b8] sm:$0xff] }
 0x176   :  { %4916 = vmatprep.subr.bf16.mxu0 %v5368_v7  ;;  %v5112_v6 = vpack.c.bf16 %v3566_v4, %v3565_v2  ;;  %v3586_v2 = vld [vmem:[%s6852_s3 + $0x640] sm:$0xff]  ;;  %v3587_v4 = vld [vmem:[%s6852_s3 + $0x648] sm:$0xff] }
 0x177   :  { %5086 = vmatpush3.bf16.msra.mxu1 %v5085_v5  ;;  %v3440_v5 = vld [vmem:[%s6852_s3 + $0x238] sm:$0xff] }
 0x178   :  { %5087 = vmatprep.subr.bf16.mxu1 %v5368_v7  ;;  %v4944_v14 = vpack.c.bf16 %v3440_v5, %v3439_v24  ;;  %v3460_v24 = vld [vmem:[%s6852_s3 + $0x2c0] sm:$0xff]  ;;  %v3461_v5 = vld [vmem:[%s6852_s3 + $0x2c8] sm:$0xff] }
 0x179   :  { %4918 = vmatpush3.bf16.msra.mxu0 %v4917_v12  ;;  %v3569_v12 = vld [vmem:[%s6852_s3 + $0x5c8] sm:$0xff] }
 0x17a   :  { %4919 = vmatprep.subr.bf16.mxu0 %v5368_v7  ;;  %v5115_v9 = vpack.c.bf16 %v3569_v12, %v3568_v10  ;;  %v6354_v10 = vmax.f32 %v5794_v11, 0.0  ;;  %v3588_v12 = vld [vmem:[%s6852_s3 + $0x650] sm:$0xff] }
 0x17b   :  { %5089 = vmatpush3.bf16.msra.mxu1 %v5088_v16  ;;  %v3443_v16 = vld [vmem:[%s6852_s3 + $0x248] sm:$0xff]  ;;  %v3462_v11 = vld [vmem:[%s6852_s3 + $0x2d0] sm:$0xff] }
 0x17c   :  { %5090 = vmatprep.subr.bf16.mxu1 %v5368_v7  ;;  %v4947_v22 = vpack.c.bf16 %v3443_v16, %v3442_v15  ;;  %v4971_v15 = vpack.c.bf16 %v3461_v5, %v3460_v24  ;;  %v3480_v24 = vld [vmem:[%s6852_s3 + $0x350] sm:$0xff]  ;;  %v3481_v5 = vld [vmem:[%s6852_s3 + $0x358] sm:$0xff] }
 0x17d   :  { %4921 = vmatpush3.bf16.msra.mxu0 %v4920_v18  ;;  %v3570_v18 = vld [vmem:[%s6852_s3 + $0x5d0] sm:$0xff] }
 0x17e   :  { %4513 = vmatmul.mubr.msk.f32.vlgmr.msra.gmra.mrb[0].mxu1 %vm363_vm2, %v6092_v25  ;;  %4922 = vmatprep.subr.bf16.mxu0 %v5368_v7  ;;  %v3453_v25 = vld [vmem:[%s6852_s3 + $0x290] sm:$0xff] }
 0x17f   :  { %5092 = vmatpush3.bf16.msra.mxu1 %v5091_v23  ;;  %4531 = vmatprep.mubr.msk.f32.mxu1 %vm5369_vm0, %v5370_v8  ;;  %v6231_v23 = vmax.f32 %v5729_v34, 0.0  ;;  %v3572_v34 = vld [vmem:[%s6852_s3 + $0x5e0] sm:$0xff] }
 0x180   :  { %4247 = vmatmul.mubr.msk.f32.vlgmr.msra.gmra.mrb[36].mxu0 %vm363_vm2, %v861_v29  ;;  %5093 = vmatprep.subr.bf16.mxu1 %v5368_v7  ;;  %v3573_v29 = vld [vmem:[%s6852_s3 + $0x5e8] sm:$0xff] }
 0x181   :  { %4924 = vmatpush3.bf16.msra.mxu0 %v4923_v27  ;;  %4265 = vmatprep.mubr.msk.f32.mxu0 %vm5369_vm0, %v5370_v8  ;;  %v5118_v27 = vpack.c.bf16 %v3571_v19, %v3570_v18  ;;  %v5121_v35 = vpack.c.bf16 %v3573_v29, %v3572_v34  ;;  %v1193_v16 = vrot.slane %v6231_v23, 4  ;;  %v3590_v18 = vld [vmem:[%s6852_s3 + $0x660] sm:$0xff]  ;;  %v3591_v19 = vld [vmem:[%s6852_s3 + $0x668] sm:$0xff]  ;;  %v3592_v34 = vld [vmem:[%s6852_s3 + $0x670] sm:$0xff] }
 0x182   :  { %4925 = vmatprep.subr.bf16.mxu0 %v5368_v7  ;;  %v3593_v29 = vld [vmem:[%s6852_s3 + $0x678] sm:$0xff] }
 0x183   :  { %5095 = vmatpush3.bf16.msra.mxu1 %v5094_v33  ;;  %v3447_v33 = vld [vmem:[%s6852_s3 + $0x268] sm:$0xff] }
 0x184   :  { %5096 = vmatprep.subr.bf16.mxu1 %v5368_v7  ;;  %v4953_v20 = vpack.c.bf16 %v3447_v33, %v3446_v30  ;;  %v3466_v30 = vld [vmem:[%s6852_s3 + $0x2f0] sm:$0xff]  ;;  %v3467_v33 = vld [vmem:[%s6852_s3 + $0x2f8] sm:$0xff] }
 0x185   :  { %4927 = vmatpush3.bf16.msra.mxu0 %v4926_v38  ;;  %v3575_v38 = vld [vmem:[%s6852_s3 + $0x5f8] sm:$0xff] }
 0x186   :  { %4928 = vmatprep.subr.bf16.mxu0 %v5368_v7  ;;  %v5124_v40 = vpack.c.bf16 %v3575_v38, %v3574_v37  ;;  %v3595_v37 = vld [vmem:[%s6852_s3 + $0x680] sm:$0xff]  ;;  %v3596_v38 = vld [vmem:[%s6852_s3 + $0x688] sm:$0xff] }
 0x187   :  { %5098 = vmatpush3.bf16.msra.mxu1 %v5097_v39  ;;  %v3449_v39 = vld [vmem:[%s6852_s3 + $0x278] sm:$0xff] }
 0x188   :  { %5099 = vmatprep.subr.bf16.mxu1 %v5368_v7  ;;  %v4956_v43 = vpack.c.bf16 %v3449_v39, %v3448_v28  ;;  %v3469_v28 = vld [vmem:[%s6852_s3 + $0x300] sm:$0xff]  ;;  %v3470_v39 = vld [vmem:[%s6852_s3 + $0x308] sm:$0xff] }
 0x189   :  { %4930 = vmatpush3.bf16.msra.mxu0 %v4929_v42  ;;  %v3578_v42 = vld [vmem:[%s6852_s3 + $0x608] sm:$0xff] }
 0x18a   :  { %4931 = vmatprep.subr.bf16.mxu0 %v5368_v7  ;;  %v5127_v47 = vpack.c.bf16 %v3578_v42, %v3577_v41  ;;  %v2438_v41 = vrot.slane %v6354_v10, 2  ;;  %v3597_v42 = vld [vmem:[%s6852_s3 + $0x690] sm:$0xff] }
 0x18b   :  { %5101 = vmatpush3.bf16.msra.mxu1 %v5100_v45  ;;  %v3452_v45 = vld [vmem:[%s6852_s3 + $0x288] sm:$0xff] }
 0x18c   :  { %5102 = vmatprep.subr.bf16.mxu1 %v5368_v7  ;;  %v4959_v52 = vpack.c.bf16 %v3452_v45, %v3451_v44  ;;  %v4983_v44 = vpack.c.bf16 %v3470_v39, %v3469_v28  ;;  %v1276_v45 = vrot.slane %v6231_v23, 6  ;;  %v1442_v28 = vrot.slane %v5745_v46, 2  ;;  %v3490_v39 = vld [vmem:[%s6852_s3 + $0x398] sm:$0xff] }
 0x18d   :  { %4933 = vmatpush3.bf16.msra.mxu0 %v4932_v49  ;;  %v3579_v49 = vld [vmem:[%s6852_s3 + $0x610] sm:$0xff] }
 0x18e   :  { %4532 = vmatmul.mubr.msk.f32.vlgmr.msra.gmra.mrb[0].mxu1 %vm363_vm2, %v2106_v54  ;;  %4934 = vmatprep.subr.bf16.mxu0 %v5368_v7  ;;  %v3454_v54 = vld [vmem:[%s6852_s3 + $0x298] sm:$0xff]  ;;  %v5130_v55 = vpack.c.bf16 %v3580_v50, %v3579_v49  ;;  %v3600_v50 = vld [vmem:[%s6852_s3 + $0x6a8] sm:$0xff] }
 0x18f   :  { %5104 = vmatpush3.bf16.msra.mxu1 %v5103_v53  ;;  %4550 = vmatprep.mubr.msk.f32.mxu1 %vm5369_vm0, %v5370_v8  ;;  %v1110_v53 = vrot.slane %v6231_v23, 2 }
 0x190   :  { %4266 = vmatmul.mubr.msk.f32.vlgmr.msra.gmra.mrb[36].mxu0 %vm363_vm2, %v944_v57  ;;  %5105 = vmatprep.subr.bf16.mxu1 %v5368_v7  ;;  %v4962_v57 = vpack.c.bf16 %v3454_v54, %v3453_v25  ;;  %v3474_v25 = vld [vmem:[%s6852_s3 + $0x328] sm:$0xff] }
 0x191   :  { %4936 = vmatpush3.bf16.msra.mxu0 %v4935_v56  ;;  %4284 = vmatprep.mubr.msk.f32.mxu0 %vm5369_vm0, %v5370_v8  ;;  %v3582_v56 = vld [vmem:[%s6852_s3 + $0x628] sm:$0xff] }
 0x192   :  { %4937 = vmatprep.subr.bf16.mxu0 %v5368_v7 }
 0x193   :  { %5107 = vmatpush3.bf16.msra.mxu1 %v5106_v60  ;;  %v5133_v60 = vpack.c.bf16 %v3582_v56, %v3581_v51  ;;  %v3602_v51 = vld [vmem:[%s6852_s3 + $0x6b8] sm:$0xff] }
 0x194   :  { %5108 = vmatprep.subr.bf16.mxu1 %v5368_v7 }
 0x195   :  { %4939 = vmatpush3.bf16.msra.mxu0 %v4938_v31  ;;  %v4965_v31 = vpack.c.bf16 %v3456_v59, %v3455_v58  ;;  %v3476_v58 = vld [vmem:[%s6852_s3 + $0x338] sm:$0xff] }
 0x196   :  { %4940 = vmatprep.subr.bf16.mxu0 %v5368_v7 }
 0x197   :  { %5110 = vmatpush3.bf16.msra.mxu1 %v5109_v1  ;;  %v5136_v1 = vpack.c.bf16 %v3584_v61, %v3583_v36  ;;  %v3605_v36 = vld [vmem:[%s6852_s3 + $0x6c8] sm:$0xff] }
 0x198   :  { %5111 = vmatprep.subr.bf16.mxu1 %v5368_v7 }
 0x199   :  { %4942 = vmatpush3.bf16.msra.mxu0 %v4941_v3  ;;  %v4968_v3 = vpack.c.bf16 %v3458_v0, %v3457_v62  ;;  %v3479_v62 = vld [vmem:[%s6852_s3 + $0x348] sm:$0xff] }
 0x19a   :  { %4943 = vmatprep.subr.bf16.mxu0 %v5368_v7 }
 0x19b   :  { %5113 = vmatpush3.bf16.msra.mxu1 %v5112_v6  ;;  %v5139_v6 = vpack.c.bf16 %v3587_v4, %v3586_v2  ;;  %v3606_v2 = vld [vmem:[%s6852_s3 + $0x6d0] sm:$0xff]  ;;  %v3607_v4 = vld [vmem:[%s6852_s3 + $0x6d8] sm:$0xff] }
 0x19c   :  { %5114 = vmatprep.subr.bf16.mxu1 %v5368_v7 }
 0x19d   :  { %4945 = vmatpush3.bf16.msra.mxu0 %v4944_v14  ;;  %v3589_v14 = vld [vmem:[%s6852_s3 + $0x658] sm:$0xff] }
 0x19e   :  { %4551 = vmatmul.mubr.msk.f32.vlgmr.msra.gmra.mrb[0].mxu1 %vm363_vm2, %v2189_v17  ;;  %4946 = vmatprep.subr.bf16.mxu0 %v5368_v7  ;;  %v5142_v17 = vpack.c.bf16 %v3589_v14, %v3588_v12  ;;  %v3608_v12 = vld [vmem:[%s6852_s3 + $0x6e0] sm:$0xff]  ;;  %v3609_v14 = vld [vmem:[%s6852_s3 + $0x6e8] sm:$0xff] }
 0x19f   :  { %5116 = vmatpush3.bf16.msra.mxu1 %v5115_v9  ;;  %4569 = vmatprep.mubr.msk.f32.mxu1 %vm5369_vm0, %v5370_v8  ;;  %v3463_v9 = vld [vmem:[%s6852_s3 + $0x2d8] sm:$0xff] }
 0x1a0   :  { %4285 = vmatmul.mubr.msk.f32.vlgmr.msra.gmra.mrb[36].mxu0 %vm363_vm2, %v6231_v23  ;;  %5117 = vmatprep.subr.bf16.mxu1 %v5368_v7  ;;  %v3599_v23 = vld [vmem:[%s6852_s3 + $0x6a0] sm:$0xff] }
 0x1a1   :  { %4948 = vmatpush3.bf16.msra.mxu0 %v4947_v22  ;;  %4303 = vmatprep.mubr.msk.f32.mxu0 %vm5369_vm0, %v5370_v8  ;;  %v4974_v22 = vpack.c.bf16 %v3463_v9, %v3462_v11  ;;  %v5157_v54 = vpack.c.bf16 %v3600_v50, %v3599_v23  ;;  %v3483_v11 = vld [vmem:[%s6852_s3 + $0x368] sm:$0xff]  ;;  %v5169_v9 = vpack.c.bf16 %v3609_v14, %v3608_v12  ;;  %v3493_v50 = vld [vmem:[%s6852_s3 + $0x3b0] sm:$0xff] }
 0x1a2   :  { %4949 = vmatprep.subr.bf16.mxu0 %v5368_v7  ;;  %v3636_v12 = vld [vmem:[%s6852_s3 + $0x7a8] sm:$0xff] }
 0x1a3   :  { %5119 = vmatpush3.bf16.msra.mxu1 %v5118_v27  ;;  %v5145_v27 = vpack.c.bf16 %v3591_v19, %v3590_v18  ;;  %v3611_v18 = vld [vmem:[%s6852_s3 + $0x6f8] sm:$0xff] }
 0x1a4   :  { %5120 = vmatprep.subr.bf16.mxu1 %v5368_v7 }
 0x1a5   :  { %4951 = vmatpush3.bf16.msra.mxu0 %v4950_v63  ;;  %v4977_v63 = vpack.c.bf16 %v3465_v13, %v3464_v26  ;;  %v3485_v26 = vld [vmem:[%s6852_s3 + $0x378] sm:$0xff] }
 0x1a6   :  { %4952 = vmatprep.subr.bf16.mxu0 %v5368_v7 }
 0x1a7   :  { %5122 = vmatpush3.bf16.msra.mxu1 %v5121_v35  ;;  %v5148_v35 = vpack.c.bf16 %v3593_v29, %v3592_v34  ;;  %v3614_v34 = vld [vmem:[%s6852_s3 + $0x708] sm:$0xff] }
 0x1a8   :  { %5123 = vmatprep.subr.bf16.mxu1 %v5368_v7 }
 0x1a9   :  { %4954 = vmatpush3.bf16.msra.mxu0 %v4953_v20  ;;  %v4980_v20 = vpack.c.bf16 %v3467_v33, %v3466_v30  ;;  %v3488_v30 = vld [vmem:[%s6852_s3 + $0x388] sm:$0xff] }
 0x1aa   :  { %4955 = vmatprep.subr.bf16.mxu0 %v5368_v7 }
 0x1ab   :  { %5125 = vmatpush3.bf16.msra.mxu1 %v5124_v40  ;;  %v5151_v40 = vpack.c.bf16 %v3596_v38, %v3595_v37  ;;  %v3615_v37 = vld [vmem:[%s6852_s3 + $0x710] sm:$0xff]  ;;  %v3616_v38 = vld [vmem:[%s6852_s3 + $0x718] sm:$0xff] }
 0x1ac   :  { %5126 = vmatprep.subr.bf16.mxu1 %v5368_v7 }
 0x1ad   :  { %4957 = vmatpush3.bf16.msra.mxu0 %v4956_v43  ;;  %v3598_v43 = vld [vmem:[%s6852_s3 + $0x698] sm:$0xff] }
 0x1ae   :  { %4570 = vmatmul.mubr.msk.f32.vlgmr.msra.gmra.mrb[0].mxu1 %vm363_vm2, %v2272_v48  ;;  %4958 = vmatprep.subr.bf16.mxu0 %v5368_v7  ;;  %v3472_v48 = vld [vmem:[%s6852_s3 + $0x318] sm:$0xff]  ;;  %v5154_v49 = vpack.c.bf16 %v3598_v43, %v3597_v42  ;;  %v3618_v42 = vld [vmem:[%s6852_s3 + $0x728] sm:$0xff] }
 0x1af   :  { %5128 = vmatpush3.bf16.msra.mxu1 %v5127_v47  ;;  %4588 = vmatprep.mubr.msk.f32.mxu1 %vm5369_vm0, %v5370_v8  ;;  %v3471_v47 = vld [vmem:[%s6852_s3 + $0x310] sm:$0xff] }
 0x1b0   :  { %4304 = vmatmul.mubr.msk.f32.vlgmr.msra.gmra.mrb[36].mxu0 %vm363_vm2, %v1110_v53  ;;  %5129 = vmatprep.subr.bf16.mxu1 %v5368_v7  ;;  %v3473_v53 = vld [vmem:[%s6852_s3 + $0x320] sm:$0xff] }
 0x1b1   :  { %4960 = vmatpush3.bf16.msra.mxu0 %v4959_v52  ;;  %4322 = vmatprep.mubr.msk.f32.mxu0 %vm5369_vm0, %v5370_v8  ;;  %v4986_v52 = vpack.c.bf16 %v3472_v48, %v3471_v47  ;;  %v4989_v56 = vpack.c.bf16 %v3474_v25, %v3473_v53  ;;  %v3619_v48 = vld [vmem:[%s6852_s3 + $0x730] sm:$0xff]  ;;  %v3622_v25 = vld [vmem:[%s6852_s3 + $0x740] sm:$0xff] }
 0x1b2   :  { %4961 = vmatprep.subr.bf16.mxu0 %v5368_v7 }
 0x1b3   :  { %5131 = vmatpush3.bf16.msra.mxu1 %v5130_v55  ;;  %v3601_v55 = vld [vmem:[%s6852_s3 + $0x6b0] sm:$0xff] }
 0x1b4   :  { %5132 = vmatprep.subr.bf16.mxu1 %v5368_v7  ;;  %v5160_v59 = vpack.c.bf16 %v3602_v51, %v3601_v55 }
 0x1b5   :  { %4963 = vmatpush3.bf16.msra.mxu0 %v4962_v57  ;;  %v3475_v57 = vld [vmem:[%s6852_s3 + $0x330] sm:$0xff] }
 0x1b6   :  { %4964 = vmatprep.subr.bf16.mxu0 %v5368_v7  ;;  %v4992_v61 = vpack.c.bf16 %v3476_v58, %v3475_v57  ;;  %v3624_v57 = vld [vmem:[%s6852_s3 + $0x750] sm:$0xff]  ;;  %v3625_v58 = vld [vmem:[%s6852_s3 + $0x758] sm:$0xff] }
 0x1b7   :  { %5134 = vmatpush3.bf16.msra.mxu1 %v5133_v60  ;;  %v3604_v60 = vld [vmem:[%s6852_s3 + $0x6c0] sm:$0xff] }
 0x1b8   :  { %5135 = vmatprep.subr.bf16.mxu1 %v5368_v7  ;;  %v5163_v0 = vpack.c.bf16 %v3605_v36, %v3604_v60  ;;  %v5190_v60 = vpack.c.bf16 %v3625_v58, %v3624_v57  ;;  %v3667_v57 = vld [vmem:[%s6852_s3 + $0x880] sm:$0xff]  ;;  %v3668_v58 = vld [vmem:[%s6852_s3 + $0x888] sm:$0xff] }
 0x1b9   :  { %4966 = vmatpush3.bf16.msra.mxu0 %v4965_v31  ;;  %v3478_v31 = vld [vmem:[%s6852_s3 + $0x340] sm:$0xff] }
 0x1ba   :  { %4967 = vmatprep.subr.bf16.mxu0 %v5368_v7 }
 0x1bb   :  { %5137 = vmatpush3.bf16.msra.mxu1 %v5136_v1  ;;  %v2521_v1 = vrot.slane %v6354_v10, 4 }
 0x1bc   :  { %5138 = vmatprep.subr.bf16.mxu1 %v5368_v7 }
 0x1bd   :  { %4969 = vmatpush3.bf16.msra.mxu0 %v4968_v3  ;;  %v4995_v3 = vpack.c.bf16 %v3479_v62, %v3478_v31  ;;  %v3629_v31 = vld [vmem:[%s6852_s3 + $0x778] sm:$0xff] }
 0x1be   :  { %4589 = vmatmul.mubr.msk.f32.vlgmr.msra.gmra.mrb[0].mxu1 %vm363_vm2, %v6354_v10  ;;  %4970 = vmatprep.subr.bf16.mxu0 %v5368_v7 }
 0x1bf   :  { %5140 = vmatpush3.bf16.msra.mxu1 %v5139_v6  ;;  %4607 = vmatprep.mubr.msk.f32.mxu1 %vm5369_vm0, %v5370_v8  ;;  %v5166_v6 = vpack.c.bf16 %v3607_v4, %v3606_v2 }
 0x1c0   :  { %4323 = vmatmul.mubr.msk.f32.vlgmr.msra.gmra.mrb[36].mxu0 %vm363_vm2, %v1193_v16  ;;  %5141 = vmatprep.subr.bf16.mxu1 %v5368_v7  ;;  %v3482_v16 = vld [vmem:[%s6852_s3 + $0x360] sm:$0xff] }
 0x1c1   :  { %4972 = vmatpush3.bf16.msra.mxu0 %v4971_v15  ;;  %4341 = vmatprep.mubr.msk.f32.mxu0 %vm5369_vm0, %v5370_v8  ;;  %v4998_v15 = vpack.c.bf16 %v3481_v5, %v3480_v24  ;;  %v5001_v19 = vpack.c.bf16 %v3483_v11, %v3482_v16  ;;  %v3634_v24 = vld [vmem:[%s6852_s3 + $0x798] sm:$0xff] }
 0x1c2   :  { %4973 = vmatprep.subr.bf16.mxu0 %v5368_v7  ;;  %v3638_v16 = vld [vmem:[%s6852_s3 + $0x7b8] sm:$0xff] }
 0x1c3   :  { %5143 = vmatpush3.bf16.msra.mxu1 %v5142_v17  ;;  %v3610_v17 = vld [vmem:[%s6852_s3 + $0x6f0] sm:$0xff] }
 0x1c4   :  { %5144 = vmatprep.subr.bf16.mxu1 %v5368_v7  ;;  %v5172_v13 = vpack.c.bf16 %v3611_v18, %v3610_v17  ;;  %v3641_v17 = vld [vmem:[%s6852_s3 + $0x7c8] sm:$0xff] }
 0x1c5   :  { %4975 = vmatpush3.bf16.msra.mxu0 %v4974_v22  ;;  %v3484_v22 = vld [vmem:[%s6852_s3 + $0x370] sm:$0xff] }
 0x1c6   :  { %4976 = vmatprep.subr.bf16.mxu0 %v5368_v7  ;;  %v5004_v29 = vpack.c.bf16 %v3485_v26, %v3484_v22  ;;  %v3642_v22 = vld [vmem:[%s6852_s3 + $0x7d0] sm:$0xff]  ;;  %v3643_v26 = vld [vmem:[%s6852_s3 + $0x7d8] sm:$0xff] }
 0x1c7   :  { %5146 = vmatpush3.bf16.msra.mxu1 %v5145_v27  ;;  %v3613_v27 = vld [vmem:[%s6852_s3 + $0x700] sm:$0xff] }
 0x1c8   :  { %5147 = vmatprep.subr.bf16.mxu1 %v5368_v7  ;;  %v5175_v33 = vpack.c.bf16 %v3614_v34, %v3613_v27  ;;  %v3644_v27 = vld [vmem:[%s6852_s3 + $0x7e0] sm:$0xff]  ;;  %v3645_v34 = vld [vmem:[%s6852_s3 + $0x7e8] sm:$0xff] }
 0x1c9   :  { %4978 = vmatpush3.bf16.msra.mxu0 %v4977_v63  ;;  %v3487_v63 = vld [vmem:[%s6852_s3 + $0x380] sm:$0xff] }
 0x1ca   :  { %4979 = vmatprep.subr.bf16.mxu0 %v5368_v7 }
 0x1cb   :  { %5149 = vmatpush3.bf16.msra.mxu1 %v5148_v35  ;;  %v2604_v35 = vrot.slane %v6354_v10, 6  ;;  %v3489_v10 = vld [vmem:[%s6852_s3 + $0x390] sm:$0xff] }
 0x1cc   :  { %5150 = vmatprep.subr.bf16.mxu1 %v5368_v7  ;;  %v5010_v43 = vpack.c.bf16 %v3490_v39, %v3489_v10  ;;  %v3652_v10 = vld [vmem:[%s6852_s3 + $0x818] sm:$0xff] }
 0x1cd   :  { %4981 = vmatpush3.bf16.msra.mxu0 %v4980_v20  ;;  %v5007_v20 = vpack.c.bf16 %v3488_v30, %v3487_v63  ;;  %v3646_v63 = vld [vmem:[%s6852_s3 + $0x7f0] sm:$0xff]  ;;  %v3647_v30 = vld [vmem:[%s6852_s3 + $0x7f8] sm:$0xff] }
 0x1ce   :  { %4608 = vmatmul.mubr.msk.f32.vlgmr.msra.gmra.mrb[0].mxu1 %vm363_vm2, %v2438_v41  ;;  %4982 = vmatprep.subr.bf16.mxu0 %v5368_v7  ;;  %v3617_v41 = vld [vmem:[%s6852_s3 + $0x720] sm:$0xff] }
 0x1cf   :  { %5152 = vmatpush3.bf16.msra.mxu1 %v5151_v40  ;;  %4626 = vmatprep.mubr.msk.f32.mxu1 %vm5369_vm0, %v5370_v8  ;;  %v5178_v40 = vpack.c.bf16 %v3616_v38, %v3615_v37  ;;  %v5181_v47 = vpack.c.bf16 %v3618_v42, %v3617_v41  ;;  %v3650_v37 = vld [vmem:[%s6852_s3 + $0x808] sm:$0xff] }
 0x1d0   :  { %4342 = vmatmul.mubr.msk.f32.vlgmr.msra.gmra.mrb[36].mxu0 %vm363_vm2, %v1276_v45  ;;  %5153 = vmatprep.subr.bf16.mxu1 %v5368_v7  ;;  %v3492_v45 = vld [vmem:[%s6852_s3 + $0x3a8] sm:$0xff] }
 0x1d1   :  { %4984 = vmatpush3.bf16.msra.mxu0 %v4983_v44  ;;  %4360 = vmatprep.mubr.msk.f32.mxu0 %vm5369_vm0, %v5370_v8  ;;  %v3491_v44 = vld [vmem:[%s6852_s3 + $0x3a0] sm:$0xff]  ;;  %v3654_v41 = vld [vmem:[%s6852_s3 + $0x828] sm:$0xff] }
 0x1d2   :  { %4985 = vmatprep.subr.bf16.mxu0 %v5368_v7  ;;  %v5013_v23 = vpack.c.bf16 %v3492_v45, %v3491_v44  ;;  %v3656_v44 = vld [vmem:[%s6852_s3 + $0x838] sm:$0xff] }
 0x1d3   :  { %5155 = vmatpush3.bf16.msra.mxu1 %v5154_v49  ;;  %v3620_v49 = vld [vmem:[%s6852_s3 + $0x738] sm:$0xff] }
 0x1d4   :  { %5156 = vmatprep.subr.bf16.mxu1 %v5368_v7  ;;  %v5184_v53 = vpack.c.bf16 %v3620_v49, %v3619_v48  ;;  %v3659_v48 = vld [vmem:[%s6852_s3 + $0x848] sm:$0xff] }
 0x1d5   :  { %4987 = vmatpush3.bf16.msra.mxu0 %v4986_v52  ;;  %v3494_v52 = vld [vmem:[%s6852_s3 + $0x3b8] sm:$0xff] }
 0x1d6   :  { %4988 = vmatprep.subr.bf16.mxu0 %v5368_v7  ;;  %v5016_v55 = vpack.c.bf16 %v3494_v52, %v3493_v50  ;;  %v3660_v50 = vld [vmem:[%s6852_s3 + $0x850] sm:$0xff]  ;;  %v3661_v52 = vld [vmem:[%s6852_s3 + $0x858] sm:$0xff] }
 0x1d7   :  { %5158 = vmatpush3.bf16.msra.mxu1 %v5157_v54  ;;  %v3623_v54 = vld [vmem:[%s6852_s3 + $0x748] sm:$0xff] }
 0x1d8   :  { %5159 = vmatprep.subr.bf16.mxu1 %v5368_v7  ;;  %v5187_v51 = vpack.c.bf16 %v3623_v54, %v3622_v25  ;;  %v3663_v25 = vld [vmem:[%s6852_s3 + $0x868] sm:$0xff] }
 0x1d9   :  { %4990 = vmatpush3.bf16.msra.mxu0 %v4989_v56  ;;  %v6607_v56 = vmax.f32 %v5811_v21, 0.0  ;;  %v3626_v21 = vld [vmem:[%s6852_s3 + $0x760] sm:$0xff] }
 0x1da   :  { %4991 = vmatprep.subr.bf16.mxu0 %v5368_v7 }
 0x1db   :  { %5161 = vmatpush3.bf16.msra.mxu1 %v5160_v59  ;;  %v1525_v59 = vrot.slane %v5745_v46, 4  ;;  %v2770_v4 = vrot.slane %v6607_v56, 2 }
 0x1dc   :  { %5162 = vmatprep.subr.bf16.mxu1 %v5368_v7 }
 0x1dd   :  { %4993 = vmatpush3.bf16.msra.mxu0 %v4992_v61  ;;  %v3628_v61 = vld [vmem:[%s6852_s3 + $0x770] sm:$0xff] }
 0x1de   :  { %4627 = vmatmul.mubr.msk.f32.vlgmr.msra.gmra.mrb[0].mxu1 %vm363_vm2, %v2521_v1  ;;  %4994 = vmatprep.subr.bf16.mxu0 %v5368_v7  ;;  %v5196_v62 = vpack.c.bf16 %v3629_v31, %v3628_v61  ;;  %v3632_v1 = vld [vmem:[%s6852_s3 + $0x788] sm:$0xff]  ;;  %v3671_v61 = vld [vmem:[%s6852_s3 + $0x8a0] sm:$0xff] }
 0x1df   :  { %5164 = vmatpush3.bf16.msra.mxu1 %v5163_v0  ;;  %4645 = vmatprep.mubr.msk.f32.mxu1 %vm5369_vm0, %v5370_v8  ;;  %v3631_v0 = vld [vmem:[%s6852_s3 + $0x780] sm:$0xff]  ;;  %v3672_v31 = vld [vmem:[%s6852_s3 + $0x8a8] sm:$0xff] }
 0x1e0   :  { %4361 = vmatmul.mubr.msk.f32.vlgmr.msra.gmra.mrb[36].mxu0 %vm363_vm2, %v5745_v46  ;;  %5165 = vmatprep.subr.bf16.mxu1 %v5368_v7  ;;  %v3627_v46 = vld [vmem:[%s6852_s3 + $0x768] sm:$0xff]  ;;  %v5199_v2 = vpack.c.bf16 %v3632_v1, %v3631_v0  ;;  %v3673_v0 = vld [vmem:[%s6852_s3 + $0x8b0] sm:$0xff]  ;;  %v3674_v1 = vld [vmem:[%s6852_s3 + $0x8b8] sm:$0xff] }
 0x1e1   :  { %4996 = vmatpush3.bf16.msra.mxu0 %v4995_v3  ;;  %4379 = vmatprep.mubr.msk.f32.mxu0 %vm5369_vm0, %v5370_v8  ;;  %v5193_v36 = vpack.c.bf16 %v3627_v46, %v3626_v21  ;;  %v3633_v3 = vld [vmem:[%s6852_s3 + $0x790] sm:$0xff]  ;;  %v3670_v46 = vld [vmem:[%s6852_s3 + $0x898] sm:$0xff] }
 0x1e2   :  { %4997 = vmatprep.subr.bf16.mxu0 %v5368_v7  ;;  %v5202_v5 = vpack.c.bf16 %v3634_v24, %v3633_v3  ;;  %v3669_v21 = vld [vmem:[%s6852_s3 + $0x890] sm:$0xff]  ;;  %v3677_v3 = vld [vmem:[%s6852_s3 + $0x8c8] sm:$0xff] }
 0x1e3   :  { %5167 = vmatpush3.bf16.msra.mxu1 %v5166_v6  ;;  %v3635_v6 = vld [vmem:[%s6852_s3 + $0x7a0] sm:$0xff] }
 0x1e4   :  { %5168 = vmatprep.subr.bf16.mxu1 %v5368_v7  ;;  %v5205_v14 = vpack.c.bf16 %v3636_v12, %v3635_v6  ;;  %v3678_v6 = vld [vmem:[%s6852_s3 + $0x8d0] sm:$0xff]  ;;  %v3679_v12 = vld [vmem:[%s6852_s3 + $0x8d8] sm:$0xff] }
 0x1e5   :  { %4999 = vmatpush3.bf16.msra.mxu0 %v4998_v15  ;;  %v3637_v15 = vld [vmem:[%s6852_s3 + $0x7b0] sm:$0xff] }
 0x1e6   :  { %5000 = vmatprep.subr.bf16.mxu0 %v5368_v7  ;;  %v5208_v11 = vpack.c.bf16 %v3638_v16, %v3637_v15  ;;  %v3680_v15 = vld [vmem:[%s6852_s3 + $0x8e0] sm:$0xff]  ;;  %v3681_v16 = vld [vmem:[%s6852_s3 + $0x8e8] sm:$0xff] }
 0x1e7   :  { %5170 = vmatpush3.bf16.msra.mxu1 %v5169_v9  ;;  %v3640_v9 = vld [vmem:[%s6852_s3 + $0x7c0] sm:$0xff] }
 0x1e8   :  { %5171 = vmatprep.subr.bf16.mxu1 %v5368_v7  ;;  %v5211_v18 = vpack.c.bf16 %v3641_v17, %v3640_v9  ;;  %v3682_v9 = vld [vmem:[%s6852_s3 + $0x8f0] sm:$0xff] }
 0x1e9   :  { %5002 = vmatpush3.bf16.msra.mxu0 %v5001_v19  ;;  %v2853_v19 = vrot.slane %v6607_v56, 4 }
 0x1ea   :  { %5003 = vmatprep.subr.bf16.mxu0 %v5368_v7 }
 0x1eb   :  { %5173 = vmatpush3.bf16.msra.mxu1 %v5172_v13  ;;  %v5214_v13 = vpack.c.bf16 %v3643_v26, %v3642_v22  ;;  %v3368_v26 = vld [vmem:[%s6853_s4] ss:$0 sm:$0xff] }
 0x1ec   :  { %5174 = vmatprep.subr.bf16.mxu1 %v5368_v7 }
 0x1ed   :  { %5005 = vmatpush3.bf16.msra.mxu0 %v5004_v29  ;;  %v5217_v29 = vpack.c.bf16 %v3645_v34, %v3644_v27 }
 0x1ee   :  { %4646 = vmatmul.mubr.msk.f32.vlgmr.msra.gmra.mrb[0].mxu1 %vm363_vm2, %v2604_v35  ;;  %5006 = vmatprep.subr.bf16.mxu0 %v5368_v7  ;;  %v3649_v35 = vld [vmem:[%s6852_s3 + $0x800] sm:$0xff] }
 0x1ef   :  { %5176 = vmatpush3.bf16.msra.mxu1 %v5175_v33  ;;  %4664 = vmatprep.mubr.msk.f32.mxu1 %vm5369_vm0, %v5370_v8  ;;  %v5220_v33 = vpack.c.bf16 %v3647_v30, %v3646_v63  ;;  %v5223_v38 = vpack.c.bf16 %v3650_v37, %v3649_v35 }
 0x1f0   :  { %4380 = vmatmul.mubr.msk.f32.vlgmr.msra.gmra.mrb[36].mxu0 %vm363_vm2, %v1442_v28  ;;  %5177 = vmatprep.subr.bf16.mxu1 %v5368_v7  ;;  %v3651_v28 = vld [vmem:[%s6852_s3 + $0x810] sm:$0xff] }
 0x1f1   :  { %5008 = vmatpush3.bf16.msra.mxu0 %v5007_v20  ;;  %4398 = vmatprep.mubr.msk.f32.mxu0 %vm5369_vm0, %v5370_v8  ;;  %v2936_v20 = vrot.slane %v6607_v56, 6  ;;  %v5226_v39 = vpack.c.bf16 %v3652_v10, %v3651_v28 }
 0x1f2   :  { %5009 = vmatprep.subr.bf16.mxu0 %v5368_v7 }
 0x1f3   :  { %5179 = vmatpush3.bf16.msra.mxu1 %v5178_v40  ;;  %v3653_v40 = vld [vmem:[%s6852_s3 + $0x820] sm:$0xff] }
 0x1f4   :  { %5180 = vmatprep.subr.bf16.mxu1 %v5368_v7  ;;  %v5229_v42 = vpack.c.bf16 %v3654_v41, %v3653_v40 }
 0x1f5   :  { %5011 = vmatpush3.bf16.msra.mxu0 %v5010_v43  ;;  %v3655_v43 = vld [vmem:[%s6852_s3 + $0x830] sm:$0xff] }
 0x1f6   :  { %5012 = vmatprep.subr.bf16.mxu0 %v5368_v7  ;;  %v5232_v45 = vpack.c.bf16 %v3656_v44, %v3655_v43 }
 0x1f7   :  { %5182 = vmatpush3.bf16.msra.mxu1 %v5181_v47  ;;  %v3658_v47 = vld [vmem:[%s6852_s3 + $0x840] sm:$0xff] }
 0x1f8   :  { %5183 = vmatprep.subr.bf16.mxu1 %v5368_v7  ;;  %v5235_v49 = vpack.c.bf16 %v3659_v48, %v3658_v47 }
 0x1f9   :  { %5014 = vmatpush3.bf16.msra.mxu0 %v5013_v23  ;;  %v6740_v23 = vmax.f32 %v5830_v32, 0.0  ;;  %v3662_v32 = vld [vmem:[%s6852_s3 + $0x860] sm:$0xff] }
 0x1fa   :  { %5015 = vmatprep.subr.bf16.mxu0 %v5368_v7  ;;  %v5241_v54 = vpack.c.bf16 %v3663_v25, %v3662_v32 }
 0x1fb   :  { %5185 = vmatpush3.bf16.msra.mxu1 %v5184_v53  ;;  %v5238_v53 = vpack.c.bf16 %v3661_v52, %v3660_v50 }
 0x1fc   :  { %5186 = vmatprep.subr.bf16.mxu1 %v5368_v7 }
 0x1fd   :  { %5017 = vmatpush3.bf16.msra.mxu0 %v5016_v55  ;;  %v3664_v55 = vld [vmem:[%s6852_s3 + $0x870] sm:$0xff] }
 0x1fe   :  { %4665 = vmatmul.mubr.msk.f32.vlgmr.msra.gmra.mrb[0].mxu1 %vm363_vm2, %v6607_v56 }
 0x1ff   :  { %5188 = vmatpush3.bf16.msra.mxu1 %v5187_v51  ;;  %4683 = vmatprep.mubr.msk.f32.mxu1 %vm5369_vm0, %v5370_v8  ;;  %v3665_v51 = vld [vmem:[%s6852_s3 + $0x878] sm:$0xff] }
 0x200   :  { %4399 = vmatmul.mubr.msk.f32.vlgmr.msra.gmra.mrb[36].mxu0 %vm363_vm2, %v1525_v59  ;;  %5189 = vmatprep.subr.bf16.mxu1 %v5368_v7  ;;  %v5244_v56 = vpack.c.bf16 %v3665_v51, %v3664_v55  ;;  %v5247_v59 = vpack.c.bf16 %v3668_v58, %v3667_v57 }
 0x203   :  { %5191 = vmatpush3.bf16.msra.mxu1 %v5190_v60  ;;  %v3102_v60 = vrot.slane %v6740_v23, 2 }
 0x204   :  { %5192 = vmatprep.subr.bf16.mxu1 %v5368_v7 }
 0x207   :  { %5194 = vmatpush3.bf16.msra.mxu1 %v5193_v36  ;;  %v5250_v36 = vpack.c.bf16 %v3670_v46, %v3669_v21 }
 0x208   :  { %5195 = vmatprep.subr.bf16.mxu1 %v5368_v7 }
 0x20b   :  { %5197 = vmatpush3.bf16.msra.mxu1 %v5196_v62  ;;  %v5253_v62 = vpack.c.bf16 %v3672_v31, %v3671_v61 }
 0x20c   :  { %5198 = vmatprep.subr.bf16.mxu1 %v5368_v7 }
 0x20e   :  { %4684 = vmatmul.mubr.msk.f32.vlgmr.msra.gmra.mrb[0].mxu1 %vm363_vm2, %v2770_v4  ;;  %v3676_v4 = vld [vmem:[%s6852_s3 + $0x8c0] sm:$0xff] }
 0x20f   :  { %5200 = vmatpush3.bf16.msra.mxu1 %v5199_v2  ;;  %4702 = vmatprep.mubr.msk.f32.mxu1 %vm5369_vm0, %v5370_v8  ;;  %v5256_v2 = vpack.c.bf16 %v3674_v1, %v3673_v0  ;;  %v5259_v24 = vpack.c.bf16 %v3677_v3, %v3676_v4 }
 0x210   :  { %5201 = vmatprep.subr.bf16.mxu1 %v5368_v7 }
 0x213   :  { %5203 = vmatpush3.bf16.msra.mxu1 %v5202_v5  ;;  %v3185_v5 = vrot.slane %v6740_v23, 4 }
 0x214   :  { %5204 = vmatprep.subr.bf16.mxu1 %v5368_v7 }
 0x217   :  { %5206 = vmatpush3.bf16.msra.mxu1 %v5205_v14  ;;  %v5262_v14 = vpack.c.bf16 %v3679_v12, %v3678_v6 }
 0x218   :  { %5207 = vmatprep.subr.bf16.mxu1 %v5368_v7 }
 0x21b   :  { %5209 = vmatpush3.bf16.msra.mxu1 %v5208_v11  ;;  %v5265_v11 = vpack.c.bf16 %v3681_v16, %v3680_v15 }
 0x21c   :  { %5210 = vmatprep.subr.bf16.mxu1 %v5368_v7 }
 0x21e   :  { %4703 = vmatmul.mubr.msk.f32.vlgmr.msra.gmra.mrb[0].mxu1 %vm363_vm2, %v2853_v19 }
 0x21f   :  { %5212 = vmatpush3.bf16.msra.mxu1 %v5211_v18  ;;  %4721 = vmatprep.mubr.msk.f32.mxu1 %vm5369_vm0, %v5370_v8  ;;  %v3268_v18 = vrot.slane %v6740_v23, 6 }
 0x220   :  { %5213 = vmatprep.subr.bf16.mxu1 %v5368_v7 }
 0x223   :  { %5215 = vmatpush3.bf16.msra.mxu1 %v5214_v13 }
 0x224   :  { %5216 = vmatprep.subr.bf16.mxu1 %v5368_v7 }
 0x227   :  { %5218 = vmatpush3.bf16.msra.mxu1 %v5217_v29 }
 0x228   :  { %5219 = vmatprep.subr.bf16.mxu1 %v5368_v7 }
 0x22b   :  { %5221 = vmatpush3.bf16.msra.mxu1 %v5220_v33 }
 0x22c   :  { %5222 = vmatprep.subr.bf16.mxu1 %v5368_v7 }
 0x22e   :  { %4722 = vmatmul.mubr.msk.f32.vlgmr.msra.gmra.mrb[0].mxu1 %vm363_vm2, %v2936_v20 }
 0x22f   :  { %5224 = vmatpush3.bf16.msra.mxu1 %v5223_v38  ;;  %4740 = vmatprep.mubr.msk.f32.mxu1 %vm5369_vm0, %v5370_v8 }
 0x230   :  { %5225 = vmatprep.subr.bf16.mxu1 %v5368_v7 }
 0x233   :  { %5227 = vmatpush3.bf16.msra.mxu1 %v5226_v39 }
 0x234   :  { %5228 = vmatprep.subr.bf16.mxu1 %v5368_v7 }
 0x237   :  { %5230 = vmatpush3.bf16.msra.mxu1 %v5229_v42 }
 0x238   :  { %5231 = vmatprep.subr.bf16.mxu1 %v5368_v7 }
 0x23b   :  { %5233 = vmatpush3.bf16.msra.mxu1 %v5232_v45 }
 0x23c   :  { %5234 = vmatprep.subr.bf16.mxu1 %v5368_v7 }
 0x23e   :  { %4741 = vmatmul.mubr.msk.f32.vlgmr.msra.gmra.mrb[0].mxu1 %vm363_vm2, %v6740_v23 }
 0x23f   :  { %5236 = vmatpush3.bf16.msra.mxu1 %v5235_v49  ;;  %4759 = vmatprep.mubr.msk.f32.mxu1 %vm5369_vm0, %v5370_v8 }
 0x240   :  { %5237 = vmatprep.subr.bf16.mxu1 %v5368_v7 }
 0x243   :  { %5239 = vmatpush3.bf16.msra.mxu1 %v5238_v53 }
 0x244   :  { %5240 = vmatprep.subr.bf16.mxu1 %v5368_v7 }
 0x247   :  { %5242 = vmatpush3.bf16.msra.mxu1 %v5241_v54 }
 0x248   :  { %5243 = vmatprep.subr.bf16.mxu1 %v5368_v7 }
 0x24b   :  { %5245 = vmatpush3.bf16.msra.mxu1 %v5244_v56 }
 0x24c   :  { %5246 = vmatprep.subr.bf16.mxu1 %v5368_v7 }
 0x24e   :  { %4760 = vmatmul.mubr.msk.f32.vlgmr.msra.gmra.mrb[0].mxu1 %vm363_vm2, %v3102_v60 }
 0x24f   :  { %5248 = vmatpush3.bf16.msra.mxu1 %v5247_v59  ;;  %4778 = vmatprep.mubr.msk.f32.mxu1 %vm5369_vm0, %v5370_v8 }
 0x250   :  { %5249 = vmatprep.subr.bf16.mxu1 %v5368_v7 }
 0x253   :  { %5251 = vmatpush3.bf16.msra.mxu1 %v5250_v36 }
 0x254   :  { %5252 = vmatprep.subr.bf16.mxu1 %v5368_v7 }
 0x257   :  { %5254 = vmatpush3.bf16.msra.mxu1 %v5253_v62 }
 0x258   :  { %5255 = vmatprep.subr.bf16.mxu1 %v5368_v7 }
 0x25b   :  { %5257 = vmatpush3.bf16.msra.mxu1 %v5256_v2 }
 0x25c   :  { %5258 = vmatprep.subr.bf16.mxu1 %v5368_v7 }
 0x25e   :  { %4779 = vmatmul.mubr.msk.f32.vlgmr.msra.gmra.mrb[0].mxu1 %vm363_vm2, %v3185_v5 }
 0x25f   :  { %5260 = vmatpush3.bf16.msra.mxu1 %v5259_v24  ;;  %4797 = vmatprep.mubr.msk.f32.mxu1 %vm5369_vm0, %v5370_v8  ;;  %v3683_v8 = vld [vmem:[%s6852_s3 + $0x8f8] sm:$0xff]  ;;  %s5344_s3 = scalar_lea.vmem %s3351_s11, 32 }
 0x260   :  { %5261 = vmatprep.subr.bf16.mxu1 %v5368_v7  ;;  %v5268_v17 = vpack.c.bf16 %v3683_v8, %v3682_v9  ;;  %p5345_p0 = scmp.ne.s32.totalorder %s3351_s11, %s5344_s3  ;;  %p5350_p2 = scmp.lt.s32.totalorder %s5344_s3, %s5344_s3 }
 0x262   :  { %p5351_p3 = por %p5350_p2, %p5349_p1 }
 0x263   :  { %5263 = vmatpush3.bf16.msra.mxu1 %v5262_v14 }
 0x264   :  { %5264 = vmatprep.subr.bf16.mxu1 %v5368_v7  ;;  %p5352_p4 = pnand %p5351_p3, %p5345_p0 }
 0x267   :  { %5266 = vmatpush3.bf16.msra.mxu1 %v5265_v11 }
 0x268   :  { %5267 = vmatprep.subr.bf16.mxu1 %v5368_v7 }
 0x26b   :  { %5269 = vmatpush3.bf16.msra.mxu1 %v5268_v17 }
 0x26e   :  { %4798 = vmatmul.mubr.msk.f32.vlgmr.msra.gmra.mrb[0].mxu1 %vm363_vm2, %v3268_v18 }
 0x2d3   :  { %v1594_v19 = vpop.f32.mrb[36].mxu0 }
 0x2d4   :  { %v4400_v22 = vpop.f32.mrb[37].mxu0  ;;  %v5270_v13 = vadd.f32 %v3368_v26, %v1594_v19 }
 0x341   :  { %v3337_v27 = vpop.f32.mrb[0].mxu1 }
 0x342   :  { %v5271_v34 = vadd.f32 %v5270_v13, %v3337_v27  ;;  %v4799_v29 = vpop.f32.mrb[1].mxu1 }
 0x344   :  { %3343 = vst.msk [vmem:[#allocation2] sm:$0x3] %vm3342_vm3, %v5271_v34 }
 0x345   :  { %5355 = shalt.err (!%p5352_p4)
}
 0x346   :  { %s5356_s4 = scalar_lea.hbm %s6854_s5, 32 }
 0x347   :  { %p5357_p5 = scmp.ne.s32.totalorder %s6854_s5, %s5356_s4  ;;  %p5360_p6 = scmp.lt.u32.totalorder %s5356_s4, %s6854_s5 }
 0x349   :  { %p5362_p7 = pnand %p5360_p6, %p5357_p5 }
 0x34b   :  { %5365 = shalt.err (!%p5362_p7)
}
 0x34c   :  { %3353 = dma.vmem_to_hbm [thread:$0]  %s3351_s11, 32, %s6854_s5, [#allocation3]  }
 0x34d   :  { %5366 = dma.done.wait [#allocation3], 32  }
 0x34e   :  { %5367 = vsyncadd [#allocation3], 4294967264 }
 0x34f   :  { %3357 = vsyncpa [#allocation3], 1 }

</bundles_post_ra>
